<compile_context>
chip_gen: v6e
topology: v6e:2x2x1
jax: 0.10.0
libtpu: 0.0.40
codegen_flags: <defaults>
</compile_context>

<pallas_src>
import functools

import jax
import jax.numpy as jnp
from jax import lax
from jax.experimental import pallas as pl
from jax.experimental.pallas import tpu as pltpu


# ----------------------------------------------------------------------------
# helpers
# ----------------------------------------------------------------------------
def _round_up(x, m):
    return ((x + m - 1) // m) * m


def _pick_h_tile(H, W, max_rows):
    """Largest TH dividing H with TH*W <= max_rows and TH*W % 8 == 0."""
    for th in range(H, 0, -1):
        if H % th != 0:
            continue
        rows = th * W
        if rows <= max_rows and (rows % 8 == 0 or th == H):
            return th
    return H


def _pick_row_tile(total, max_rows):
    for d in range(min(total, max_rows), 0, -1):
        if total % d == 0 and (d % 8 == 0 or d == total):
            return d
    return total


# ----------------------------------------------------------------------------
# pass 1 kernels: conv + per-channel sum / sum-of-squares accumulation
# ----------------------------------------------------------------------------
def _conv_stats_kernel(x_ref, w_ref, y_ref, st_ref, patch_ref, *, TH, W, Cin, K):
    """Standard KxK conv for one (image, H-tile).

    x_ref:     (Hp, Wp, Cin)   padded image, resident across the H-tile axis
    w_ref:     (K*K*Cin, Cp)   im2col-ordered weights (lane-dense Cout)
    y_ref:     (TM, Cp)        f32 conv output tile
    st_ref:    (2, Cp)         per-image [sum; sum_sq] accumulator (revisited)
    patch_ref: (TM, K*K*Cin)   VMEM scratch im2col slab
    """
    t = pl.program_id(1)
    r0 = pl.multiple_of(t * TH, TH)

    # im2col: gather the K*K shifted windows once into a VMEM slab, then do a
    # single MXU matmul with a real contraction depth (K*K*Cin).
    for kh in range(K):
        for kw in range(K):
            idx = kh * K + kw
            sl = x_ref[pl.ds(r0 + kh, TH), kw:kw + W, :]           # (TH, W, Cin)
            patch_ref[:, idx * Cin:(idx + 1) * Cin] = sl.reshape(TH * W, Cin)

    acc = jnp.dot(patch_ref[...], w_ref[...],
                  preferred_element_type=jnp.float32)              # (TM, Cp) f32
    y_ref[...] = acc

    @pl.when(t == 0)
    def _():
        st_ref[...] = jnp.zeros_like(st_ref)

    st_ref[0:1, :] = st_ref[0:1, :] + jnp.sum(acc, axis=0, keepdims=True)
    st_ref[1:2, :] = st_ref[1:2, :] + jnp.sum(acc * acc, axis=0, keepdims=True)


def _dwconv_stats_kernel(x_ref, wd_ref, wp_ref, y_ref, st_ref, dw_ref,
                         *, TH, W, Cin, K):
    """Depthwise KxK + pointwise 1x1 conv, fused per (image, H-tile).

    wd_ref: (K*K, Cin)  depthwise taps
    wp_ref: (Cin, Cp)   pointwise weights (lane-dense Cout)
    dw_ref: (TM, Cin)   f32 VMEM scratch accumulator for the depthwise result
    """
    t = pl.program_id(1)
    r0 = pl.multiple_of(t * TH, TH)

    dw_ref[...] = jnp.zeros_like(dw_ref)
    for kh in range(K):
        for kw in range(K):
            idx = kh * K + kw
            sl = x_ref[pl.ds(r0 + kh, TH), kw:kw + W, :].reshape(TH * W, Cin)
            dw_ref[...] = dw_ref[...] + (
                sl.astype(jnp.float32)
                * wd_ref[idx:idx + 1, :].astype(jnp.float32))

    acc = jnp.dot(dw_ref[...].astype(wp_ref.dtype), wp_ref[...],
                  preferred_element_type=jnp.float32)              # (TM, Cp) f32
    y_ref[...] = acc

    @pl.when(t == 0)
    def _():
        st_ref[...] = jnp.zeros_like(st_ref)

    st_ref[0:1, :] = st_ref[0:1, :] + jnp.sum(acc, axis=0, keepdims=True)
    st_ref[1:2, :] = st_ref[1:2, :] + jnp.sum(acc * acc, axis=0, keepdims=True)


# ----------------------------------------------------------------------------
# pass 2 kernel: fused BN-apply (precomputed scale/bias) + ReLU
# ----------------------------------------------------------------------------
def _bn_relu_kernel(y_ref, scale_ref, bias_ref, o_ref):
    o_ref[...] = jnp.maximum(
        y_ref[...] * scale_ref[...] + bias_ref[...], 0.0).astype(o_ref.dtype)


# ----------------------------------------------------------------------------
# public wrapper (NCHW in / NCHW out, like the PyTorch module)
# ----------------------------------------------------------------------------
def conv_bn_act(x_nchw, params, *, kernel_size, depthwise=False, eps=1e-5,
                compute_dtype=jnp.bfloat16, max_rows_per_tile=512):
    N, Cin, H, W = x_nchw.shape
    K = kernel_size
    p = K // 2
    Cout = params["gamma"].shape[0]
    Cp = _round_up(Cout, 128)                     # lane-dense output width

    # NCHW -> NHWC + zero-pad (wrapper-side XLA glue; see TODO at top).
    x_nhwc = jnp.transpose(x_nchw, (0, 2, 3, 1)).astype(compute_dtype)
    x_pad = jnp.pad(x_nhwc, ((0, 0), (p, p), (p, p), (0, 0)))
    Hp, Wp = H + 2 * p, W + 2 * p

    TH = _pick_h_tile(H, W, max_rows_per_tile)
    TM = TH * W
    n_t = H // TH
    kkc = K * K * Cin

    cparams1 = pltpu.CompilerParams(
        dimension_semantics=("parallel", "arbitrary"),
        vmem_limit_bytes=32 * 1024 * 1024)

    y_shape = jax.ShapeDtypeStruct((N, H * W, Cp), jnp.float32)
    st_shape = jax.ShapeDtypeStruct((N, 2, Cp), jnp.float32)

    # Padded image is resident across the inner (H-tile) axis; halo rows are
    # read with in-kernel dynamic slices, so HBM traffic stays 1x.
    x_spec = pl.BlockSpec((None, Hp, Wp, Cin), lambda n, t: (n, 0, 0, 0))
    y_spec = pl.BlockSpec((None, TM, Cp), lambda n, t: (n, t, 0))
    st_spec = pl.BlockSpec((None, 2, Cp), lambda n, t: (n, 0, 0))

    if depthwise:
        # PyTorch depthwise weight (Cin, 1, K, K) -> (K*K, Cin)
        wd = jnp.transpose(params["depth_w"][:, 0], (1, 2, 0)
                           ).reshape(K * K, Cin).astype(compute_dtype)
        # PyTorch pointwise weight (Cout, Cin, 1, 1) -> (Cin, Cp), zero-padded
        wp = jnp.transpose(params["point_w"][:, :, 0, 0], (1, 0)
                           ).astype(compute_dtype)
        wp = jnp.pad(wp, ((0, 0), (0, Cp - Cout)))
        kernel = functools.partial(_dwconv_stats_kernel,
                                   TH=TH, W=W, Cin=Cin, K=K)
        y, stats = pl.pallas_call(
            kernel,
            grid=(N, n_t),
            in_specs=[x_spec,
                      pl.BlockSpec((K * K, Cin), lambda n, t: (0, 0)),
                      pl.BlockSpec((Cin, Cp), lambda n, t: (0, 0))],
            out_specs=(y_spec, st_spec),
            out_shape=(y_shape, st_shape),
            scratch_shapes=[pltpu.VMEM((TM, Cin), jnp.float32)],
            compiler_params=cparams1,
        )(x_pad, wd, wp)
    else:
        # PyTorch conv weight (Cout, Cin, K, K) -> (K*K*Cin, Cp), zero-padded,
        # rows ordered to match the in-kernel im2col column order.
        w = jnp.transpose(params["conv_w"], (2, 3, 1, 0)
                          ).reshape(kkc, Cout).astype(compute_dtype)
        w = jnp.pad(w, ((0, 0), (0, Cp - Cout)))
        kernel = functools.partial(_conv_stats_kernel,
                                   TH=TH, W=W, Cin=Cin, K=K)
        y, stats = pl.pallas_call(
            kernel,
            grid=(N, n_t),
            in_specs=[x_spec,
                      pl.BlockSpec((kkc, Cp), lambda n, t: (0, 0))],
            out_specs=(y_spec, st_spec),
            out_shape=(y_shape, st_shape),
            scratch_shapes=[pltpu.VMEM((TM, kkc), compute_dtype)],
            compiler_params=cparams1,
        )(x_pad, w)

    # Finalize the global BN statistics (tiny per-channel math, XLA).
    count = float(N * H * W)
    total = jnp.sum(stats[:, 0, :], axis=0)
    total_sq = jnp.sum(stats[:, 1, :], axis=0)
    mean = total / count
    var = jnp.maximum(total_sq / count - mean * mean, 0.0)
    gamma = jnp.pad(params["gamma"].astype(jnp.float32), (0, Cp - Cout))
    beta = jnp.pad(params["beta"].astype(jnp.float32), (0, Cp - Cout))
    scale = gamma * lax.rsqrt(var + eps)
    bias = beta - mean * scale

    # Pass 2: fused normalize + ReLU over large lane-dense row tiles.
    rows = N * H * W
    y2 = y.reshape(rows, Cp)
    TM2 = _pick_row_tile(rows, 2048)
    out2 = pl.pallas_call(
        _bn_relu_kernel,
        grid=(rows // TM2,),
        in_specs=[pl.BlockSpec((TM2, Cp), lambda i: (i, 0)),
                  pl.BlockSpec((1, Cp), lambda i: (0, 0)),
                  pl.BlockSpec((1, Cp), lambda i: (0, 0))],
        out_specs=pl.BlockSpec((TM2, Cp), lambda i: (i, 0)),
        out_shape=jax.ShapeDtypeStruct((rows, Cp), jnp.float32),
        compiler_params=pltpu.CompilerParams(
            dimension_semantics=("parallel",),
            vmem_limit_bytes=32 * 1024 * 1024),
    )(y2, scale.reshape(1, Cp), bias.reshape(1, Cp))

    out_nhwc = out2.reshape(N, H, W, Cp)[..., :Cout]
    return jnp.transpose(out_nhwc, (0, 3, 1, 2))      # back to NCHW


# ----------------------------------------------------------------------------
# pure-JAX (XLA) reference mirroring the PyTorch forward
# ----------------------------------------------------------------------------
def _reference(x_nchw, params, *, kernel_size, depthwise=False, eps=1e-5):
    p = kernel_size // 2
    dn = ("NCHW", "OIHW", "NCHW")
    if depthwise:
        y = lax.conv_general_dilated(x_nchw, params["depth_w"], (1, 1),
                                     [(p, p), (p, p)], dimension_numbers=dn,
                                     feature_group_count=x_nchw.shape[1])
        y = lax.conv_general_dilated(y, params["point_w"], (1, 1),
                                     [(0, 0), (0, 0)], dimension_numbers=dn)
    else:
        y = lax.conv_general_dilated(x_nchw, params["conv_w"], (1, 1),
                                     [(p, p), (p, p)], dimension_numbers=dn)
    mean = jnp.mean(y, axis=(0, 2, 3), keepdims=True)
    var = jnp.mean((y - mean) ** 2, axis=(0, 2, 3), keepdims=True)
    g = params["gamma"].reshape(1, -1, 1, 1)
    b = params["beta"].reshape(1, -1, 1, 1)
    y = (y - mean) * lax.rsqrt(var + eps) * g + b
    return jnp.maximum(y, 0.0)


if __name__ == "__main__":
    key = jax.random.PRNGKey(0)
    k_x, k_w, k_wd, k_wp = jax.random.split(key, 4)

    N, Cin, H, W = 2, 4, 16, 16
    Cout, K = 8, 3

    x = jax.random.normal(k_x, (N, Cin, H, W), jnp.float32)

    # ---------------- standard path (depthwise=False) ----------------
    params_std = {
        "conv_w": 0.1 * jax.random.normal(k_w, (Cout, Cin, K, K), jnp.float32),
        "gamma": jnp.ones((Cout,), jnp.float32),   # nn.BatchNorm2d init
        "beta": jnp.zeros((Cout,), jnp.float32),
    }
    ref_std = _reference(x, params_std, kernel_size=K, depthwise=False)

    # exact (f32 streams) check
    out_std = conv_bn_act(x, params_std, kernel_size=K, depthwise=False,
                          compute_dtype=jnp.float32)
    out_std = jax.block_until_ready(out_std)
    assert out_std.shape == (N, Cout, H, W)
    assert jnp.allclose(out_std, ref_std, atol=1e-4, rtol=1e-4)

    # small tiles -> exercises multi-tile grid + cross-tile stat accumulation
    out_tiled = conv_bn_act(x, params_std, kernel_size=K, depthwise=False,
                            compute_dtype=jnp.float32, max_rows_per_tile=64)
    out_tiled = jax.block_until_ready(out_tiled)
    assert jnp.allclose(out_tiled, ref_std, atol=1e-4, rtol=1e-4)

    # default bf16 streams (f32 accumulation / stats) -> loose tolerance
    out_bf16 = conv_bn_act(x, params_std, kernel_size=K, depthwise=False)
    out_bf16 = jax.block_until_ready(out_bf16)
    assert jnp.max(jnp.abs(out_bf16 - ref_std)) < 0.1

    # ---------------- depthwise-separable path ----------------
    params_dw = {
        "depth_w": 0.1 * jax.random.normal(k_wd, (Cin, 1, K, K), jnp.float32),
        "point_w": 0.1 * jax.random.normal(k_wp, (Cout, Cin, 1, 1), jnp.float32),
        "gamma": jnp.ones((Cout,), jnp.float32),
        "beta": jnp.zeros((Cout,), jnp.float32),
    }
    ref_dw = _reference(x, params_dw, kernel_size=K, depthwise=True)

    out_dw = conv_bn_act(x, params_dw, kernel_size=K, depthwise=True,
                         compute_dtype=jnp.float32)
    out_dw = jax.block_until_ready(out_dw)
    assert out_dw.shape == (N, Cout, H, W)
    assert jnp.allclose(out_dw, ref_dw, atol=1e-4, rtol=1e-4)

    out_dw_bf16 = conv_bn_act(x, params_dw, kernel_size=K, depthwise=True)
    out_dw_bf16 = jax.block_until_ready(out_dw_bf16)
    assert jnp.max(jnp.abs(out_dw_bf16 - ref_dw)) < 0.1

    print("KERNEL_OK")
</pallas_src>

<mosaic_0001>
module attributes {stable_mosaic.version = 11 : i64} {
  func.func @_conv_stats_kernel(%arg0: i32, %arg1: i32, %arg2: memref<1x18x18x4xf32, #tpu.memory_space<vmem>>, %arg3: memref<36x128xf32, #tpu.memory_space<vmem>>, %arg4: memref<1x256x128xf32, #tpu.memory_space<vmem>>, %arg5: memref<1x2x128xf32, #tpu.memory_space<vmem>>, %arg6: memref<256x36xf32, #tpu.memory_space<vmem>>) attributes {dimension_semantics = [#tpu.dimension_semantics<parallel>, #tpu.dimension_semantics<arbitrary>], iteration_bounds = array<i64: 2, 1>, scalar_prefetch = 0 : i64, scratch_operands = 1 : i64, tpu.core_type = #tpu.core_type<tc>, window_params = [{transform_indices = @transform_0, window_bounds = array<i64: 1, 18, 18, 4>}, {pipeline_mode = #tpu.pipeline_mode<synchronous>, transform_indices = @transform_1, window_bounds = array<i64: 36, 128>}, {transform_indices = @transform_2, window_bounds = array<i64: 1, 256, 128>}, {transform_indices = @transform_3, window_bounds = array<i64: 1, 2, 128>}]} {
    %c16_i32 = arith.constant 16 : i32
    %0 = arith.muli %arg1, %c16_i32 : i32
    %1 = tpu.assume_multiple %0, 16 : i32
    %c0_i32 = arith.constant 0 : i32
    %2 = arith.addi %1, %c0_i32 : i32
    %c0 = arith.constant 0 : index
    %3 = arith.index_cast %2 : i32 to index
    %c0_0 = arith.constant 0 : index
    %c0_1 = arith.constant 0 : index
    %4 = vector.load %arg2[%c0, %3, %c0_0, %c0_1] : memref<1x18x18x4xf32, #tpu.memory_space<vmem>>, vector<1x16x16x4xf32>
    %5 = vector.shape_cast %4 : vector<1x16x16x4xf32> to vector<16x16x4xf32>
    %6 = vector.shape_cast %5 : vector<16x16x4xf32> to vector<256x4xf32>
    %c0_2 = arith.constant 0 : index
    %c0_3 = arith.constant 0 : index
    %7 = vector.load %arg6[%c0_2, %c0_3] : memref<256x36xf32, #tpu.memory_space<vmem>>, vector<256x4xf32>
    tpu.vector_store %arg6[%c0_2, %c0_3], %6 {strides = array<i32>} : memref<256x36xf32, #tpu.memory_space<vmem>>, vector<256x4xf32>,
    %c0_i32_4 = arith.constant 0 : i32
    %8 = arith.addi %1, %c0_i32_4 : i32
    %c0_5 = arith.constant 0 : index
    %9 = arith.index_cast %8 : i32 to index
    %c1 = arith.constant 1 : index
    %c0_6 = arith.constant 0 : index
    %10 = vector.load %arg2[%c0_5, %9, %c1, %c0_6] : memref<1x18x18x4xf32, #tpu.memory_space<vmem>>, vector<1x16x16x4xf32>
    %11 = vector.shape_cast %10 : vector<1x16x16x4xf32> to vector<16x16x4xf32>
    %12 = vector.shape_cast %11 : vector<16x16x4xf32> to vector<256x4xf32>
    %c0_7 = arith.constant 0 : index
    %c4 = arith.constant 4 : index
    %13 = vector.load %arg6[%c0_7, %c4] : memref<256x36xf32, #tpu.memory_space<vmem>>, vector<256x4xf32>
    tpu.vector_store %arg6[%c0_7, %c4], %12 {strides = array<i32>} : memref<256x36xf32, #tpu.memory_space<vmem>>, vector<256x4xf32>,
    %c0_i32_8 = arith.constant 0 : i32
    %14 = arith.addi %1, %c0_i32_8 : i32
    %c0_9 = arith.constant 0 : index
    %15 = arith.index_cast %14 : i32 to index
    %c2 = arith.constant 2 : index
    %c0_10 = arith.constant 0 : index
    %16 = vector.load %arg2[%c0_9, %15, %c2, %c0_10] : memref<1x18x18x4xf32, #tpu.memory_space<vmem>>, vector<1x16x16x4xf32>
    %17 = vector.shape_cast %16 : vector<1x16x16x4xf32> to vector<16x16x4xf32>
    %18 = vector.shape_cast %17 : vector<16x16x4xf32> to vector<256x4xf32>
    %c0_11 = arith.constant 0 : index
    %c8 = arith.constant 8 : index
    %19 = vector.load %arg6[%c0_11, %c8] : memref<256x36xf32, #tpu.memory_space<vmem>>, vector<256x4xf32>
    tpu.vector_store %arg6[%c0_11, %c8], %18 {strides = array<i32>} : memref<256x36xf32, #tpu.memory_space<vmem>>, vector<256x4xf32>,
    %c1_i32 = arith.constant 1 : i32
    %20 = arith.addi %1, %c1_i32 : i32
    %c0_12 = arith.constant 0 : index
    %21 = arith.index_cast %20 : i32 to index
    %c0_13 = arith.constant 0 : index
    %c0_14 = arith.constant 0 : index
    %22 = vector.load %arg2[%c0_12, %21, %c0_13, %c0_14] : memref<1x18x18x4xf32, #tpu.memory_space<vmem>>, vector<1x16x16x4xf32>
    %23 = vector.shape_cast %22 : vector<1x16x16x4xf32> to vector<16x16x4xf32>
    %24 = vector.shape_cast %23 : vector<16x16x4xf32> to vector<256x4xf32>
    %c0_15 = arith.constant 0 : index
    %c12 = arith.constant 12 : index
    %25 = vector.load %arg6[%c0_15, %c12] : memref<256x36xf32, #tpu.memory_space<vmem>>, vector<256x4xf32>
    tpu.vector_store %arg6[%c0_15, %c12], %24 {strides = array<i32>} : memref<256x36xf32, #tpu.memory_space<vmem>>, vector<256x4xf32>,
    %c1_i32_16 = arith.constant 1 : i32
    %26 = arith.addi %1, %c1_i32_16 : i32
    %c0_17 = arith.constant 0 : index
    %27 = arith.index_cast %26 : i32 to index
    %c1_18 = arith.constant 1 : index
    %c0_19 = arith.constant 0 : index
    %28 = vector.load %arg2[%c0_17, %27, %c1_18, %c0_19] : memref<1x18x18x4xf32, #tpu.memory_space<vmem>>, vector<1x16x16x4xf32>
    %29 = vector.shape_cast %28 : vector<1x16x16x4xf32> to vector<16x16x4xf32>
    %30 = vector.shape_cast %29 : vector<16x16x4xf32> to vector<256x4xf32>
    %c0_20 = arith.constant 0 : index
    %c16 = arith.constant 16 : index
    %31 = vector.load %arg6[%c0_20, %c16] : memref<256x36xf32, #tpu.memory_space<vmem>>, vector<256x4xf32>
    tpu.vector_store %arg6[%c0_20, %c16], %30 {strides = array<i32>} : memref<256x36xf32, #tpu.memory_space<vmem>>, vector<256x4xf32>,
    %c1_i32_21 = arith.constant 1 : i32
    %32 = arith.addi %1, %c1_i32_21 : i32
    %c0_22 = arith.constant 0 : index
    %33 = arith.index_cast %32 : i32 to index
    %c2_23 = arith.constant 2 : index
    %c0_24 = arith.constant 0 : index
    %34 = vector.load %arg2[%c0_22, %33, %c2_23, %c0_24] : memref<1x18x18x4xf32, #tpu.memory_space<vmem>>, vector<1x16x16x4xf32>
    %35 = vector.shape_cast %34 : vector<1x16x16x4xf32> to vector<16x16x4xf32>
    %36 = vector.shape_cast %35 : vector<16x16x4xf32> to vector<256x4xf32>
    %c0_25 = arith.constant 0 : index
    %c20 = arith.constant 20 : index
    %37 = vector.load %arg6[%c0_25, %c20] : memref<256x36xf32, #tpu.memory_space<vmem>>, vector<256x4xf32>
    tpu.vector_store %arg6[%c0_25, %c20], %36 {strides = array<i32>} : memref<256x36xf32, #tpu.memory_space<vmem>>, vector<256x4xf32>,
    %c2_i32 = arith.constant 2 : i32
    %38 = arith.addi %1, %c2_i32 : i32
    %c0_26 = arith.constant 0 : index
    %39 = arith.index_cast %38 : i32 to index
    %c0_27 = arith.constant 0 : index
    %c0_28 = arith.constant 0 : index
    %40 = vector.load %arg2[%c0_26, %39, %c0_27, %c0_28] : memref<1x18x18x4xf32, #tpu.memory_space<vmem>>, vector<1x16x16x4xf32>
    %41 = vector.shape_cast %40 : vector<1x16x16x4xf32> to vector<16x16x4xf32>
    %42 = vector.shape_cast %41 : vector<16x16x4xf32> to vector<256x4xf32>
    %c0_29 = arith.constant 0 : index
    %c24 = arith.constant 24 : index
    %43 = vector.load %arg6[%c0_29, %c24] : memref<256x36xf32, #tpu.memory_space<vmem>>, vector<256x4xf32>
    tpu.vector_store %arg6[%c0_29, %c24], %42 {strides = array<i32>} : memref<256x36xf32, #tpu.memory_space<vmem>>, vector<256x4xf32>,
    %c2_i32_30 = arith.constant 2 : i32
    %44 = arith.addi %1, %c2_i32_30 : i32
    %c0_31 = arith.constant 0 : index
    %45 = arith.index_cast %44 : i32 to index
    %c1_32 = arith.constant 1 : index
    %c0_33 = arith.constant 0 : index
    %46 = vector.load %arg2[%c0_31, %45, %c1_32, %c0_33] : memref<1x18x18x4xf32, #tpu.memory_space<vmem>>, vector<1x16x16x4xf32>
    %47 = vector.shape_cast %46 : vector<1x16x16x4xf32> to vector<16x16x4xf32>
    %48 = vector.shape_cast %47 : vector<16x16x4xf32> to vector<256x4xf32>
    %c0_34 = arith.constant 0 : index
    %c28 = arith.constant 28 : index
    %49 = vector.load %arg6[%c0_34, %c28] : memref<256x36xf32, #tpu.memory_space<vmem>>, vector<256x4xf32>
    tpu.vector_store %arg6[%c0_34, %c28], %48 {strides = array<i32>} : memref<256x36xf32, #tpu.memory_space<vmem>>, vector<256x4xf32>,
    %c2_i32_35 = arith.constant 2 : i32
    %50 = arith.addi %1, %c2_i32_35 : i32
    %c0_36 = arith.constant 0 : index
    %51 = arith.index_cast %50 : i32 to index
    %c2_37 = arith.constant 2 : index
    %c0_38 = arith.constant 0 : index
    %52 = vector.load %arg2[%c0_36, %51, %c2_37, %c0_38] : memref<1x18x18x4xf32, #tpu.memory_space<vmem>>, vector<1x16x16x4xf32>
    %53 = vector.shape_cast %52 : vector<1x16x16x4xf32> to vector<16x16x4xf32>
    %54 = vector.shape_cast %53 : vector<16x16x4xf32> to vector<256x4xf32>
    %c0_39 = arith.constant 0 : index
    %c32 = arith.constant 32 : index
    %55 = vector.load %arg6[%c0_39, %c32] : memref<256x36xf32, #tpu.memory_space<vmem>>, vector<256x4xf32>
    tpu.vector_store %arg6[%c0_39, %c32], %54 {strides = array<i32>} : memref<256x36xf32, #tpu.memory_space<vmem>>, vector<256x4xf32>,
    %c0_40 = arith.constant 0 : index
    %c0_41 = arith.constant 0 : index
    %56 = vector.load %arg6[%c0_40, %c0_41] : memref<256x36xf32, #tpu.memory_space<vmem>>, vector<256x36xf32>
    %c0_42 = arith.constant 0 : index
    %c0_43 = arith.constant 0 : index
    %57 = vector.load %arg3[%c0_42, %c0_43] : memref<36x128xf32, #tpu.memory_space<vmem>>, vector<36x128xf32>
    %cst = arith.constant dense<0.000000e+00> : vector<256x128xf32>
    %58 = tpu.matmul %56, %57, %cst {dimension_numbers = #tpu.dot_dimension_numbers<[1], [0], [0], [1], [0, 0, 1, 1], [], []>} : vector<256x36xf32>, vector<36x128xf32>, vector<256x128xf32> -> vector<256x128xf32>
    %c0_44 = arith.constant 0 : index
    %c0_45 = arith.constant 0 : index
    %c0_46 = arith.constant 0 : index
    %59 = vector.load %arg4[%c0_44, %c0_45, %c0_46] : memref<1x256x128xf32, #tpu.memory_space<vmem>>, vector<1x256x128xf32>
    %60 = vector.shape_cast %59 : vector<1x256x128xf32> to vector<256x128xf32>
    %61 = vector.shape_cast %58 : vector<256x128xf32> to vector<1x256x128xf32>
    tpu.vector_store %arg4[%c0_44, %c0_45, %c0_46], %61 {strides = array<i32>} : memref<1x256x128xf32, #tpu.memory_space<vmem>>, vector<1x256x128xf32>,
    %c0_i32_47 = arith.constant 0 : i32
    %62 = arith.cmpi eq, %arg1, %c0_i32_47 : i32
    %63 = arith.extui %62 : i1 to i32
    %c0_i32_48 = arith.constant 0 : i32
    %64 = arith.cmpi ne, %63, %c0_i32_48 : i32
    scf.if %64 {
      %cst_63 = arith.constant 0.000000e+00 : f32
      %82 = vector.broadcast %cst_63 : f32 to vector<2x128xf32>
      %c0_64 = arith.constant 0 : index
      %c0_65 = arith.constant 0 : index
      %c0_66 = arith.constant 0 : index
      %83 = vector.load %arg5[%c0_64, %c0_65, %c0_66] : memref<1x2x128xf32, #tpu.memory_space<vmem>>, vector<1x2x128xf32>
      %84 = vector.shape_cast %83 : vector<1x2x128xf32> to vector<2x128xf32>
      %85 = vector.shape_cast %82 : vector<2x128xf32> to vector<1x2x128xf32>
      tpu.vector_store %arg5[%c0_64, %c0_65, %c0_66], %85 {strides = array<i32>} : memref<1x2x128xf32, #tpu.memory_space<vmem>>, vector<1x2x128xf32>,
    } else {
    }
    %c0_49 = arith.constant 0 : index
    %c0_50 = arith.constant 0 : index
    %c0_51 = arith.constant 0 : index
    %65 = vector.load %arg5[%c0_49, %c0_50, %c0_51] : memref<1x2x128xf32, #tpu.memory_space<vmem>>, vector<1x1x128xf32>
    %66 = vector.shape_cast %65 : vector<1x1x128xf32> to vector<1x128xf32>
    %cst_52 = arith.constant dense<0.000000e+00> : vector<128xf32>
    %67 = vector.multi_reduction <add>, %58, %cst_52 [0] : vector<256x128xf32> to vector<128xf32>
    %68 = vector.shape_cast %67 : vector<128xf32> to vector<1x128xf32>
    %69 = arith.addf %66, %68 : vector<1x128xf32>
    %c0_53 = arith.constant 0 : index
    %c0_54 = arith.constant 0 : index
    %c0_55 = arith.constant 0 : index
    %70 = vector.load %arg5[%c0_53, %c0_54, %c0_55] : memref<1x2x128xf32, #tpu.memory_space<vmem>>, vector<1x1x128xf32>
    %71 = vector.shape_cast %70 : vector<1x1x128xf32> to vector<1x128xf32>
    %72 = vector.shape_cast %69 : vector<1x128xf32> to vector<1x1x128xf32>
    tpu.vector_store %arg5[%c0_53, %c0_54, %c0_55], %72 {strides = array<i32>} : memref<1x2x128xf32, #tpu.memory_space<vmem>>, vector<1x1x128xf32>,
    %c0_56 = arith.constant 0 : index
    %c1_57 = arith.constant 1 : index
    %c0_58 = arith.constant 0 : index
    %73 = vector.load %arg5[%c0_56, %c1_57, %c0_58] : memref<1x2x128xf32, #tpu.memory_space<vmem>>, vector<1x1x128xf32>
    %74 = vector.shape_cast %73 : vector<1x1x128xf32> to vector<1x128xf32>
    %75 = arith.mulf %58, %58 : vector<256x128xf32>
    %cst_59 = arith.constant dense<0.000000e+00> : vector<128xf32>
    %76 = vector.multi_reduction <add>, %75, %cst_59 [0] : vector<256x128xf32> to vector<128xf32>
    %77 = vector.shape_cast %76 : vector<128xf32> to vector<1x128xf32>
    %78 = arith.addf %74, %77 : vector<1x128xf32>
    %c0_60 = arith.constant 0 : index
    %c1_61 = arith.constant 1 : index
    %c0_62 = arith.constant 0 : index
    %79 = vector.load %arg5[%c0_60, %c1_61, %c0_62] : memref<1x2x128xf32, #tpu.memory_space<vmem>>, vector<1x1x128xf32>
    %80 = vector.shape_cast %79 : vector<1x1x128xf32> to vector<1x128xf32>
    %81 = vector.shape_cast %78 : vector<1x128xf32> to vector<1x1x128xf32>
    tpu.vector_store %arg5[%c0_60, %c1_61, %c0_62], %81 {strides = array<i32>} : memref<1x2x128xf32, #tpu.memory_space<vmem>>, vector<1x1x128xf32>,
    return
  }
  func.func @transform_0(%arg0: i32, %arg1: i32) -> (i32, i32, i32, i32) {
    %c0_i32 = arith.constant 0 : i32
    %c0_i32_0 = arith.constant 0 : i32
    %c0_i32_1 = arith.constant 0 : i32
    %c0_i32_2 = arith.constant 0 : i32
    return %arg0, %c0_i32, %c0_i32_0, %c0_i32_1 : i32, i32, i32, i32
  }
  func.func @transform_1(%arg0: i32, %arg1: i32) -> (i32, i32) {
    %c0_i32 = arith.constant 0 : i32
    %c0_i32_0 = arith.constant 0 : i32
    %c0_i32_1 = arith.constant 0 : i32
    return %c0_i32, %c0_i32_0 : i32, i32
  }
  func.func @transform_2(%arg0: i32, %arg1: i32) -> (i32, i32, i32) {
    %c0_i32 = arith.constant 0 : i32
    %c0_i32_0 = arith.constant 0 : i32
    return %arg0, %arg1, %c0_i32 : i32, i32, i32
  }
  func.func @transform_3(%arg0: i32, %arg1: i32) -> (i32, i32, i32) {
    %c0_i32 = arith.constant 0 : i32
    %c0_i32_0 = arith.constant 0 : i32
    %c0_i32_1 = arith.constant 0 : i32
    return %arg0, %c0_i32, %c0_i32_0 : i32, i32, i32
  }
}

</mosaic_0001>

<bundles_post_ra>
// kernel: tpu_custom_call.1
= control target key start
LH: loop header
LB: loop body
LE: loop exit
PB: predicated region body
PF: predicated region fallthrough
CT: control target
= control target key end

     0   :  { %9 = vsyncpa [#allocation4], 0  ;;  %s4211_s0 = inlined_call_operand.vmem [shape: f32[2,18,18,4], index: 0, kind: input, shape index: {}]   ;;  %s4212_s1 = inlined_call_operand.vmem [shape: f32[36,128], index: 1, kind: input, shape index: {}]   ;;  %s4213_s2 = inlined_call_operand.hbm [shape: f32[2,256,128], index: 2, kind: output, shape index: {0}]   ;;  %s4214_s3 = inlined_call_operand.hbm [shape: f32[2,2,128], index: 3, kind: output, shape index: {1}]  }
   0x1   :  { %11 = vsyncpa [#allocation4 + $0x1], 0 }
   0x2   :  { %12 = vsyncpa [#allocation6], 0 }
   0x3   :  { %14 = vsyncpa [#allocation6 + $0x1], 0  ;;  %s3031_s12 = smov 0   ;;  %s3033_s13 = smov 0  }
   0x4   :  { %s3035_s14 = smov 0   ;;  %s3037_s15 = smov 0  }
   0x5   :  { %s3039_s16 = smov 0   ;;  %s3041_s17 = smov 0  }
   0x6 LB: > { %s2474_s18 = sadd.s32 4294967295, %s2997_s17   ;;  %s2475_s19 = sadd.s32 4294967294, %s2997_s17   ;;  %s2997_s17 = sphi %s3041_s17, %s20_s17   ;;  %s2993_s16 = sphi %s3039_s16, %s4221_s16   ;;  %s2989_s15 = sphi %s3037_s15, %s4220_s15   ;;  %s2985_s14 = sphi %s3035_s14, %s4219_s14   ;;  %s2981_s13 = sphi %s3033_s13, %s4218_s13   ;;  %s2977_s12 = sphi %s3031_s12, %s4217_s12  }
   0x7   : > { %s32_s20 = sadd.s32 1, %s2993_s16  ;;  %s88_s21 = sadd.s32 1, %s2985_s14 }
   0x8   : > { %p34_p0 = scmp.ge.s32.totalorder %s32_s20, 2  ;;  %p98_p1 = scmp.ne.s32.totalorder %s2985_s14, %s2981_s13 }
   0x9   : > { %p99_p2 = scmp.eq.s32.totalorder %s2474_s18, 1  ;;  %p104_p3 = scmp.ne.s32.totalorder %s2981_s13, %s2977_s12 }
   0xa   : > { %s4223_s20 = smov (%p34_p0, %s32_s20), 0  ;;  %p105_p5 = scmp.eq.s32.totalorder %s2475_s19, 1 }
   0xb   : > { %p3071_p4 = por %p99_p2, %p98_p1  ;;  %s83_s23 = ssub.s32 %s2993_s16, %s4223_s20 }
   0xc   : > { %p2478_p6 = scmp.ge.s32.totalorder %s2997_s17, 1  ;;  %p86_p7 = scmp.eq.s32.totalorder %s83_s23, 0 }
   0xd   : > { %p3078_p8 = por %p105_p5, %p104_p3  ;;  %p160_p9 = scmp.lt.s32.totalorder %s2997_s17, 3 }
   0xe   : > { %s3084_s25 = scalar_select %p86_p7, %s2985_s14, %s88_s21  }
   0xf   : > { %p161_p10 = pnand %p2478_p6, %p160_p9 }
  0x10   : > { %p189_p11 = scmp.lt.s32.totalorder (!%p161_p10), %s2989_s15, 1  ;;  %s2999_s4 = smov (!%p161_p10), 4  }
  0x11   : > { %164 = sbr.rel (%p161_p10) target bundleno = 899 (0x383), region = 28  ;;  %s3000_s5 = smov (!%p161_p10), 8  }
  0x12   : > { %s3001_s6 = smov (!%p161_p10), 12   ;;  %s3002_s7 = smov (!%p161_p10), 16  }
  0x13   : > { %s3003_s8 = smov (!%p161_p10), 20   ;;  %s3004_s9 = smov (!%p161_p10), 24  }
  0x14   : > { %s3005_s21 = smov (!%p161_p10), 28   ;;  %s3006_s10 = smov (!%p161_p10), 32  }
  0x15   : > { %s2714_s11 = sshll.u32 (!%p161_p10), %s2989_s15, 12  ;;  %s3008_s28 = smov (!%p161_p10), [#allocation3]  }
  0x16   : > { %s190_s26 = scalar_select %p189_p11, %s2989_s15, 1  ;;  %vm230_vm0 = vcmask 31744   ;;  %vm423_vm1 = vcmask 64544   ;;  %vm1947_vm2 = vcmask 1043456   ;;  %vm616_vm3 = vcmask 97344  }
  0x17   : > { %vm812_vm4 = vcmask 130144   ;;  %vm1005_vm5 = vcmask 162944   ;;  %vm1198_vm6 = vcmask 195744   ;;  %vm1394_vm7 = vcmask 228544   ;;  %s4137_s23 = scalar_lea.hbm %s4213_s2, %s2714_s11  ;;  %s2895_s29 = sshll.u32 %s3008_s28, 4  ;;  %s2896_s29 = int_to_ptr.vmem [resolvable:$false] %s2895_s29 }
  0x18   : > { %s2820_s27 = smul.u32 432, %s190_s26  ;;  %vm1587_vm8 = vcmask 261344   ;;  %vm1780_vm9 = vcmask 294144   ;;  %vm1850_vm10 = vcmask 293888  }
  0x1a   : > { %s3091_s30 = scalar_lea.vmem %s4211_s0, %s2820_s27 }
  0x1b   : > { %v3094_v0 = vld [vmem:[%s3091_s30 + $0x19] sm:$0xff]  ;;  %v263_v1 = vld [vmem:[%s3091_s30 + $0x1] sm:$0xff]  ;;  %v264_v3 = vld [vmem:[%s3091_s30 + $0x9] sm:$0xff] }
  0x1c   : > { %331 = vrot.lane.b32.xlu1 %v3094_v0, %s2999_s4  ;;  %327 = vrot.lane.b32.xlu0 %v263_v1, %s2999_s4  ;;  %v3101_v2 = vld [vmem:[%s3091_s30 + $0x21] sm:$0xff]  ;;  %v3108_v4 = vld [vmem:[%s3091_s30 + $0x39] sm:$0xff] }
  0x1d   : > { %v3111_v5 = vld [vmem:[%s3091_s30 + $0x31] sm:$0xff]  ;;  %v3121_v7 = vld [vmem:[%s3091_s30 + $0x49] sm:$0xff]  ;;  %v3131_v9 = vld [vmem:[%s3091_s30 + $0x61] sm:$0xff] }
  0x1e   : > { %v3118_v6 = vld [vmem:[%s3091_s30 + $0x51] sm:$0xff]  ;;  %v3128_v8 = vld [vmem:[%s3091_s30 + $0x69] sm:$0xff]  ;;  %v3138_v10 = vld [vmem:[%s3091_s30 + $0x81] sm:$0xff] }
  0x1f   : > { %v3141_v11 = vld [vmem:[%s3091_s30 + $0x79] sm:$0xff]  ;;  %v3155_v15 = vld [vmem:[%s3091_s30 + $0x91] sm:$0xff]  ;;  %v199_v17 = vld [vmem:[%s3091_s30 + $0x8] sm:$0xff] }
  0x20   : > { %333 = vrot.lane.b32.xlu1 %v3101_v2, %s2999_s4  ;;  %329 = vrot.lane.b32.xlu0 %v264_v3, %s2999_s4  ;;  %v3148_v12 = vld [vmem:[%s3091_s30 + $0x18] sm:$0xff]  ;;  %v198_v13 = vld [vmem:[%s3091_s30] sm:$0xff]  ;;  %232 = vst.msk [vmem:[#allocation2 + $0x8] sm:$0xff] %vm230_vm0, %v199_v17 }
  0x21   : > { %v3152_v14 = vld [vmem:[%s3091_s30 + $0x99] sm:$0xff]  ;;  %233 = vst.msk [vmem:[#allocation2 + $0x10] sm:$0xff] %vm230_vm0, %v3148_v12  ;;  %231 = vst.msk [vmem:[#allocation2] sm:$0xff] %vm230_vm0, %v198_v13  ;;  %v3167_v18 = vld [vmem:[%s3091_s30 + $0xb1] sm:$0xff] }
  0x22   : > { %v3161_v16 = vld [vmem:[%s3091_s30 + $0x20] sm:$0xff]  ;;  %v3171_v19 = vld [vmem:[%s3091_s30 + $0x38] sm:$0xff]  ;;  %v3174_v20 = vld [vmem:[%s3091_s30 + $0x30] sm:$0xff] }
  0x23   : > { %234 = vst.msk [vmem:[#allocation2 + $0x18] sm:$0xff] %vm230_vm0, %v3161_v16  ;;  %v3181_v21 = vld [vmem:[%s3091_s30 + $0xa9] sm:$0xff]  ;;  %236 = vst.msk [vmem:[#allocation2 + $0x28] sm:$0xff] %vm230_vm0, %v3171_v19  ;;  %v3199_v25 = vld [vmem:[%s3091_s30 + $0x60] sm:$0xff] }
  0x24   : > { %337 = vrot.lane.b32.xlu1 %v3108_v4, %s2999_s4  ;;  %335 = vrot.lane.b32.xlu0 %v3111_v5, %s2999_s4  ;;  %235 = vst.msk [vmem:[#allocation2 + $0x20] sm:$0xff] %vm230_vm0, %v3174_v20  ;;  %v3188_v22 = vld [vmem:[%s3091_s30 + $0x50] sm:$0xff]  ;;  %v3193_v23 = vld [vmem:[%s3091_s30 + $0x48] sm:$0xff]  ;;  %239 = vst.msk [vmem:[#allocation2 + $0x40] sm:$0xff] %vm230_vm0, %v3199_v25 }
  0x25   : > { %238 = vst.msk [vmem:[#allocation2 + $0x38] sm:$0xff] %vm230_vm0, %v3188_v22  ;;  %v3196_v24 = vld [vmem:[%s3091_s30 + $0x68] sm:$0xff]  ;;  %237 = vst.msk [vmem:[#allocation2 + $0x30] sm:$0xff] %vm230_vm0, %v3193_v23  ;;  %v3208_v26 = vld [vmem:[%s3091_s30 + $0x80] sm:$0xff] }
  0x26   : > { %240 = vst.msk [vmem:[#allocation2 + $0x48] sm:$0xff] %vm230_vm0, %v3196_v24  ;;  %v3211_v27 = vld [vmem:[%s3091_s30 + $0x78] sm:$0xff]  ;;  %v280_v29 = vld [vmem:[%s3091_s30 + $0xc9] sm:$0xff]  ;;  %v279_v30 = vld [vmem:[%s3091_s30 + $0xc1] sm:$0xff] }
  0x27   : > { %v3214_v28 = vld [vmem:[%s3091_s30 + $0x98] sm:$0xff]  ;;  %242 = vst.msk [vmem:[#allocation2 + $0x58] sm:$0xff] %vm230_vm0, %v3208_v26  ;;  %241 = vst.msk [vmem:[#allocation2 + $0x50] sm:$0xff] %vm230_vm0, %v3211_v27  ;;  %v3225_v31 = vld [vmem:[%s3091_s30 + $0x90] sm:$0xff] }
  0x28   : > { %341 = vrot.lane.b32.xlu1 %v3118_v6, %s2999_s4  ;;  %339 = vrot.lane.b32.xlu0 %v3121_v7, %s2999_s4  ;;  %244 = vst.msk [vmem:[#allocation2 + $0x68] sm:$0xff] %vm230_vm0, %v3214_v28  ;;  %v3228_v32 = vld [vmem:[%s3091_s30 + $0xb0] sm:$0xff]  ;;  %v3231_v33 = vld [vmem:[%s3091_s30 + $0xa8] sm:$0xff]  ;;  %243 = vst.msk [vmem:[#allocation2 + $0x60] sm:$0xff] %vm230_vm0, %v3225_v31 }
  0x29   : > { %246 = vst.msk [vmem:[#allocation2 + $0x78] sm:$0xff] %vm230_vm0, %v3228_v32  ;;  %245 = vst.msk [vmem:[#allocation2 + $0x70] sm:$0xff] %vm230_vm0, %v3231_v33  ;;  %v3244_v34 = vld [vmem:[%s3091_s30 + $0xc8] sm:$0xff]  ;;  %v3247_v35 = vld [vmem:[%s3091_s30 + $0xc0] sm:$0xff] }
  0x2a   : > { %248 = vst.msk [vmem:[#allocation2 + $0x88] sm:$0xff] %vm230_vm0, %v3244_v34  ;;  %247 = vst.msk [vmem:[#allocation2 + $0x80] sm:$0xff] %vm230_vm0, %v3247_v35  ;;  %v3254_v36 = vld [vmem:[%s3091_s30 + $0xe0] sm:$0xff]  ;;  %v3257_v37 = vld [vmem:[%s3091_s30 + $0xd8] sm:$0xff] }
  0x2b   : > { %v3260_v38 = vld [vmem:[%s3091_s30 + $0xf8] sm:$0xff]  ;;  %250 = vst.msk [vmem:[#allocation2 + $0x98] sm:$0xff] %vm230_vm0, %v3254_v36  ;;  %249 = vst.msk [vmem:[#allocation2 + $0x90] sm:$0xff] %vm230_vm0, %v3257_v37  ;;  %v3269_v39 = vld [vmem:[%s3091_s30 + $0xf0] sm:$0xff] }
  0x2c   : > { %345 = vrot.lane.b32.xlu1 %v3128_v8, %s2999_s4  ;;  %343 = vrot.lane.b32.xlu0 %v3131_v9, %s2999_s4  ;;  %252 = vst.msk [vmem:[#allocation2 + $0xa8] sm:$0xff] %vm230_vm0, %v3260_v38  ;;  %v3272_v40 = vld [vmem:[%s3091_s30 + $0x110] sm:$0xff]  ;;  %v3275_v41 = vld [vmem:[%s3091_s30 + $0x108] sm:$0xff]  ;;  %251 = vst.msk [vmem:[#allocation2 + $0xa0] sm:$0xff] %vm230_vm0, %v3269_v39 }
  0x2d   : > { %254 = vst.msk [vmem:[#allocation2 + $0xb8] sm:$0xff] %vm230_vm0, %v3272_v40  ;;  %253 = vst.msk [vmem:[#allocation2 + $0xb0] sm:$0xff] %vm230_vm0, %v3275_v41  ;;  %v282_v42 = vld [vmem:[%s3091_s30 + $0xe1] sm:$0xff]  ;;  %v281_v43 = vld [vmem:[%s3091_s30 + $0xd9] sm:$0xff] }
  0x2e   : > { %v3288_v44 = vld [vmem:[%s3091_s30 + $0x120] sm:$0xff]  ;;  %v3291_v45 = vld [vmem:[%s3091_s30 + $0x128] sm:$0xff]  ;;  %v283_v47 = vld [vmem:[%s3091_s30 + $0xf1] sm:$0xff] }
  0x2f   : > { %255 = vst.msk [vmem:[#allocation2 + $0xc0] sm:$0xff] %vm230_vm0, %v3288_v44  ;;  %256 = vst.msk [vmem:[#allocation2 + $0xc8] sm:$0xff] %vm230_vm0, %v3291_v45  ;;  %v284_v46 = vld [vmem:[%s3091_s30 + $0xf9] sm:$0xff]  ;;  %v286_v50 = vld [vmem:[%s3091_s30 + $0x111] sm:$0xff] }
  0x30   : > { %349 = vrot.lane.b32.xlu1 %v3138_v10, %s2999_s4  ;;  %347 = vrot.lane.b32.xlu0 %v3141_v11, %s2999_s4  ;;  %v224_v48 = vld [vmem:[%s3091_s30 + $0x138] sm:$0xff]  ;;  %v225_v49 = vld [vmem:[%s3091_s30 + $0x140] sm:$0xff] }
  0x31   : > { %257 = vst.msk [vmem:[#allocation2 + $0xd0] sm:$0xff] %vm230_vm0, %v224_v48  ;;  %258 = vst.msk [vmem:[#allocation2 + $0xd8] sm:$0xff] %vm230_vm0, %v225_v49  ;;  %v285_v51 = vld [vmem:[%s3091_s30 + $0x109] sm:$0xff]  ;;  %v227_v53 = vld [vmem:[%s3091_s30 + $0x158] sm:$0xff] }
  0x32   : > { %v226_v52 = vld [vmem:[%s3091_s30 + $0x150] sm:$0xff]  ;;  %260 = vst.msk [vmem:[#allocation2 + $0xe8] sm:$0xff] %vm230_vm0, %v227_v53  ;;  %v287_v55 = vld [vmem:[%s3091_s30 + $0x121] sm:$0xff]  ;;  %v289_v59 = vld [vmem:[%s3091_s30 + $0x139] sm:$0xff] }
  0x33   : > { %259 = vst.msk [vmem:[#allocation2 + $0xe0] sm:$0xff] %vm230_vm0, %v226_v52  ;;  %v288_v54 = vld [vmem:[%s3091_s30 + $0x129] sm:$0xff]  ;;  %v290_v58 = vld [vmem:[%s3091_s30 + $0x141] sm:$0xff]  ;;  %v292_v60 = vld [vmem:[%s3091_s30 + $0x159] sm:$0xff] }
  0x34   : > { %353 = vrot.lane.b32.xlu1 %v3152_v14, %s2999_s4  ;;  %351 = vrot.lane.b32.xlu0 %v3155_v15, %s2999_s4  ;;  %v228_v56 = vld [vmem:[%s3091_s30 + $0x168] sm:$0xff]  ;;  %v229_v57 = vld [vmem:[%s3091_s30 + $0x170] sm:$0xff] }
  0x35   : > { %261 = vst.msk [vmem:[#allocation2 + $0xf0] sm:$0xff] %vm230_vm0, %v228_v56  ;;  %262 = vst.msk [vmem:[#allocation2 + $0xf8] sm:$0xff] %vm230_vm0, %v229_v57  ;;  %v291_v61 = vld [vmem:[%s3091_s30 + $0x151] sm:$0xff]  ;;  %v293_v63 = vld [vmem:[%s3091_s30 + $0x169] sm:$0xff] }
  0x36   : > { %v294_v62 = vld [vmem:[%s3091_s30 + $0x171] sm:$0xff]  ;;  %v456_v3 = vld [vmem:[%s3091_s30 + $0x2] sm:$0xff]  ;;  %v3343_v17 = vld [vmem:[%s3091_s30 + $0x1a] sm:$0xff] }
  0x37   : > { %v457_v1 = vld [vmem:[%s3091_s30 + $0xa] sm:$0xff]  ;;  %v3340_v13 = vld [vmem:[%s3091_s30 + $0x22] sm:$0xff]  ;;  %v3383_v49 = vld [vmem:[%s3091_s30 + $0x7a] sm:$0xff] }
  0x38   : > { %357 = vrot.lane.b32.xlu1 %v3167_v18, %s2999_s4  ;;  %355 = vrot.lane.b32.xlu0 %v3181_v21, %s2999_s4  ;;  %v3380_v48 = vld [vmem:[%s3091_s30 + $0x82] sm:$0xff]  ;;  %v3400_v52 = vld [vmem:[%s3091_s30 + $0xb2] sm:$0xff] }
  0x39   : > { %v3403_v53 = vld [vmem:[%s3091_s30 + $0xaa] sm:$0xff]  ;;  %v475_v56 = vld [vmem:[%s3091_s30 + $0xe2] sm:$0xff]  ;;  %v474_v57 = vld [vmem:[%s3091_s30 + $0xda] sm:$0xff] }
  0x3c   : > { %361 = vrot.lane.b32.xlu1 %v280_v29, %s2999_s4  ;;  %359 = vrot.lane.b32.xlu0 %v279_v30, %s2999_s4  ;;  %v3350_v29 = vld [vmem:[%s3091_s30 + $0x3a] sm:$0xff]  ;;  %v3353_v30 = vld [vmem:[%s3091_s30 + $0x32] sm:$0xff] }
  0x40   : > { %365 = vrot.lane.b32.xlu1 %v282_v42, %s2999_s4  ;;  %363 = vrot.lane.b32.xlu0 %v281_v43, %s2999_s4  ;;  %v3360_v42 = vld [vmem:[%s3091_s30 + $0x52] sm:$0xff]  ;;  %v3363_v43 = vld [vmem:[%s3091_s30 + $0x4a] sm:$0xff] }
  0x44   : > { %369 = vrot.lane.b32.xlu1 %v284_v46, %s2999_s4  ;;  %367 = vrot.lane.b32.xlu0 %v283_v47, %s2999_s4  ;;  %v3370_v46 = vld [vmem:[%s3091_s30 + $0x6a] sm:$0xff]  ;;  %v3373_v47 = vld [vmem:[%s3091_s30 + $0x62] sm:$0xff] }
  0x48   : > { %373 = vrot.lane.b32.xlu1 %v286_v50, %s2999_s4  ;;  %371 = vrot.lane.b32.xlu0 %v285_v51, %s2999_s4  ;;  %v3390_v50 = vld [vmem:[%s3091_s30 + $0x9a] sm:$0xff]  ;;  %v3393_v51 = vld [vmem:[%s3091_s30 + $0x92] sm:$0xff] }
  0x4c   : > { %377 = vrot.lane.b32.xlu1 %v288_v54, %s2999_s4  ;;  %375 = vrot.lane.b32.xlu0 %v287_v55, %s2999_s4  ;;  %v3410_v54 = vld [vmem:[%s3091_s30 + $0xca] sm:$0xff]  ;;  %v3413_v55 = vld [vmem:[%s3091_s30 + $0xc2] sm:$0xff] }
  0x50   : > { %381 = vrot.lane.b32.xlu1 %v290_v58, %s2999_s4  ;;  %379 = vrot.lane.b32.xlu0 %v289_v59, %s2999_s4  ;;  %v477_v58 = vld [vmem:[%s3091_s30 + $0xfa] sm:$0xff]  ;;  %v476_v59 = vld [vmem:[%s3091_s30 + $0xf2] sm:$0xff] }
  0x54   : > { %385 = vrot.lane.b32.xlu1 %v292_v60, %s2999_s4  ;;  %383 = vrot.lane.b32.xlu0 %v291_v61, %s2999_s4  ;;  %v479_v60 = vld [vmem:[%s3091_s30 + $0x112] sm:$0xff]  ;;  %v478_v61 = vld [vmem:[%s3091_s30 + $0x10a] sm:$0xff] }
  0x58   : > { %389 = vrot.lane.b32.xlu1 %v294_v62, %s2999_s4  ;;  %387 = vrot.lane.b32.xlu0 %v293_v63, %s2999_s4  ;;  %v481_v62 = vld [vmem:[%s3091_s30 + $0x12a] sm:$0xff]  ;;  %v480_v63 = vld [vmem:[%s3091_s30 + $0x122] sm:$0xff]  ;;  %s2897_s4 = scalar_lea.vmem %s2896_s29, 8192 }
  0x5c   : > { %522 = vrot.lane.b32.xlu1 %v457_v1, %s3000_s5  ;;  %520 = vrot.lane.b32.xlu0 %v456_v3, %s3000_s5  ;;  %v483_v1 = vld [vmem:[%s3091_s30 + $0x142] sm:$0xff]  ;;  %v482_v3 = vld [vmem:[%s3091_s30 + $0x13a] sm:$0xff] }
  0x60   : > { %526 = vrot.lane.b32.xlu1 %v3340_v13, %s3000_s5  ;;  %524 = vrot.lane.b32.xlu0 %v3343_v17, %s3000_s5 }
  0x64   : > { %530 = vrot.lane.b32.xlu1 %v3350_v29, %s3000_s5  ;;  %528 = vrot.lane.b32.xlu0 %v3353_v30, %s3000_s5 }
  0x68   : > { %534 = vrot.lane.b32.xlu1 %v3360_v42, %s3000_s5  ;;  %532 = vrot.lane.b32.xlu0 %v3363_v43, %s3000_s5 }
  0x6c   : > { %538 = vrot.lane.b32.xlu1 %v3370_v46, %s3000_s5  ;;  %536 = vrot.lane.b32.xlu0 %v3373_v47, %s3000_s5 }
  0x70   : > { %542 = vrot.lane.b32.xlu1 %v3380_v48, %s3000_s5  ;;  %540 = vrot.lane.b32.xlu0 %v3383_v49, %s3000_s5 }
  0x74   : > { %546 = vrot.lane.b32.xlu1 %v3390_v50, %s3000_s5  ;;  %544 = vrot.lane.b32.xlu0 %v3393_v51, %s3000_s5 }
  0x78   : > { %550 = vrot.lane.b32.xlu1 %v3400_v52, %s3000_s5  ;;  %548 = vrot.lane.b32.xlu0 %v3403_v53, %s3000_s5 }
  0x7c   : > { %554 = vrot.lane.b32.xlu1 %v3410_v54, %s3000_s5  ;;  %552 = vrot.lane.b32.xlu0 %v3413_v55, %s3000_s5 }
  0x80   : > { %558 = vrot.lane.b32.xlu1 %v475_v56, %s3000_s5  ;;  %556 = vrot.lane.b32.xlu0 %v474_v57, %s3000_s5 }
  0x84   : > { %562 = vrot.lane.b32.xlu1 %v477_v58, %s3000_s5  ;;  %560 = vrot.lane.b32.xlu0 %v476_v59, %s3000_s5  ;;  %v485_v58 = vld [vmem:[%s3091_s30 + $0x15a] sm:$0xff]  ;;  %v484_v59 = vld [vmem:[%s3091_s30 + $0x152] sm:$0xff] }
  0x88   : > { %566 = vrot.lane.b32.xlu1 %v479_v60, %s3000_s5  ;;  %564 = vrot.lane.b32.xlu0 %v478_v61, %s3000_s5 }
  0x8c   : > { %570 = vrot.lane.b32.xlu1 %v481_v62, %s3000_s5  ;;  %568 = vrot.lane.b32.xlu0 %v480_v63, %s3000_s5  ;;  %v487_v62 = vld [vmem:[%s3091_s30 + $0x172] sm:$0xff]  ;;  %v486_v63 = vld [vmem:[%s3091_s30 + $0x16a] sm:$0xff] }
  0x8e   : > { %v332_v56 = vpop.permute.xlu1 %331  ;;  %v328_v57 = vpop.permute.xlu0 %327 }
  0x8f   : > { %426 = vst.msk [vmem:[#allocation2 + $0x10] sm:$0xff] %vm423_vm1, %v332_v56  ;;  %424 = vst.msk [vmem:[#allocation2] sm:$0xff] %vm423_vm1, %v328_v57 }
  0x90   : > { %574 = vrot.lane.b32.xlu1 %v483_v1, %s3000_s5  ;;  %572 = vrot.lane.b32.xlu0 %v482_v3, %s3000_s5 }
  0x92   : > { %v334_v60 = vpop.permute.xlu1 %333  ;;  %v330_v61 = vpop.permute.xlu0 %329 }
  0x93   : > { %427 = vst.msk [vmem:[#allocation2 + $0x18] sm:$0xff] %vm423_vm1, %v334_v60  ;;  %425 = vst.msk [vmem:[#allocation2 + $0x8] sm:$0xff] %vm423_vm1, %v330_v61 }
  0x94   : > { %578 = vrot.lane.b32.xlu1 %v485_v58, %s3000_s5  ;;  %576 = vrot.lane.b32.xlu0 %v484_v59, %s3000_s5 }
  0x96   : > { %v338_v56 = vpop.permute.xlu1 %337  ;;  %v336_v57 = vpop.permute.xlu0 %335 }
  0x97   : > { %429 = vst.msk [vmem:[#allocation2 + $0x28] sm:$0xff] %vm423_vm1, %v338_v56  ;;  %428 = vst.msk [vmem:[#allocation2 + $0x20] sm:$0xff] %vm423_vm1, %v336_v57 }
  0x98   : > { %582 = vrot.lane.b32.xlu1 %v487_v62, %s3000_s5  ;;  %580 = vrot.lane.b32.xlu0 %v486_v63, %s3000_s5 }
  0x9a   : > { %v342_v1 = vpop.permute.xlu1 %341  ;;  %v340_v3 = vpop.permute.xlu0 %339 }
  0x9b   : > { %431 = vst.msk [vmem:[#allocation2 + $0x38] sm:$0xff] %vm423_vm1, %v342_v1  ;;  %430 = vst.msk [vmem:[#allocation2 + $0x30] sm:$0xff] %vm423_vm1, %v340_v3 }
  0x9c   : > { %718 = vrot.lane.b32.xlu1 %v3161_v16, %s3001_s6  ;;  %716 = vrot.lane.b32.xlu0 %v3148_v12, %s3001_s6 }
  0x9e   : > { %v346_v58 = vpop.permute.xlu1 %345  ;;  %v344_v59 = vpop.permute.xlu0 %343 }
  0x9f   : > { %433 = vst.msk [vmem:[#allocation2 + $0x48] sm:$0xff] %vm423_vm1, %v346_v58  ;;  %432 = vst.msk [vmem:[#allocation2 + $0x40] sm:$0xff] %vm423_vm1, %v344_v59 }
  0xa0   : > { %722 = vrot.lane.b32.xlu1 %v3171_v19, %s3001_s6  ;;  %720 = vrot.lane.b32.xlu0 %v3174_v20, %s3001_s6 }
  0xa2   : > { %v350_v60 = vpop.permute.xlu1 %349  ;;  %v348_v61 = vpop.permute.xlu0 %347 }
  0xa3   : > { %435 = vst.msk [vmem:[#allocation2 + $0x58] sm:$0xff] %vm423_vm1, %v350_v60  ;;  %434 = vst.msk [vmem:[#allocation2 + $0x50] sm:$0xff] %vm423_vm1, %v348_v61 }
  0xa4   : > { %726 = vrot.lane.b32.xlu1 %v3188_v22, %s3001_s6  ;;  %724 = vrot.lane.b32.xlu0 %v3193_v23, %s3001_s6 }
  0xa6   : > { %v354_v12 = vpop.permute.xlu1 %353  ;;  %v352_v16 = vpop.permute.xlu0 %351 }
  0xa7   : > { %437 = vst.msk [vmem:[#allocation2 + $0x68] sm:$0xff] %vm423_vm1, %v354_v12  ;;  %436 = vst.msk [vmem:[#allocation2 + $0x60] sm:$0xff] %vm423_vm1, %v352_v16 }
  0xa8   : > { %730 = vrot.lane.b32.xlu1 %v3196_v24, %s3001_s6  ;;  %728 = vrot.lane.b32.xlu0 %v3199_v25, %s3001_s6 }
  0xaa   : > { %v358_v62 = vpop.permute.xlu1 %357  ;;  %v356_v63 = vpop.permute.xlu0 %355 }
  0xab   : > { %439 = vst.msk [vmem:[#allocation2 + $0x78] sm:$0xff] %vm423_vm1, %v358_v62  ;;  %438 = vst.msk [vmem:[#allocation2 + $0x70] sm:$0xff] %vm423_vm1, %v356_v63 }
  0xac   : > { %734 = vrot.lane.b32.xlu1 %v3208_v26, %s3001_s6  ;;  %732 = vrot.lane.b32.xlu0 %v3211_v27, %s3001_s6 }
  0xae   : > { %v362_v56 = vpop.permute.xlu1 %361  ;;  %v360_v57 = vpop.permute.xlu0 %359 }
  0xaf   : > { %441 = vst.msk [vmem:[#allocation2 + $0x88] sm:$0xff] %vm423_vm1, %v362_v56  ;;  %440 = vst.msk [vmem:[#allocation2 + $0x80] sm:$0xff] %vm423_vm1, %v360_v57 }
  0xb0   : > { %738 = vrot.lane.b32.xlu1 %v3214_v28, %s3001_s6  ;;  %736 = vrot.lane.b32.xlu0 %v3225_v31, %s3001_s6 }
  0xb2   : > { %v366_v1 = vpop.permute.xlu1 %365  ;;  %v364_v3 = vpop.permute.xlu0 %363 }
  0xb3   : > { %443 = vst.msk [vmem:[#allocation2 + $0x98] sm:$0xff] %vm423_vm1, %v366_v1  ;;  %442 = vst.msk [vmem:[#allocation2 + $0x90] sm:$0xff] %vm423_vm1, %v364_v3  ;;  %v1848_v1 = vld [vmem:[%s4212_s1 + $0x18] sm:$0xff] }
  0xb4   : > { %742 = vrot.lane.b32.xlu1 %v3228_v32, %s3001_s6  ;;  %740 = vrot.lane.b32.xlu0 %v3231_v33, %s3001_s6 }
  0xb6   : > { %v370_v58 = vpop.permute.xlu1 %369  ;;  %v368_v59 = vpop.permute.xlu0 %367 }
  0xb7   : > { %445 = vst.msk [vmem:[#allocation2 + $0xa8] sm:$0xff] %vm423_vm1, %v370_v58  ;;  %444 = vst.msk [vmem:[#allocation2 + $0xa0] sm:$0xff] %vm423_vm1, %v368_v59  ;;  %v1846_v58 = vld [vmem:[%s4212_s1 + $0x8] sm:$0xff] }
  0xb8   : > { %746 = vrot.lane.b32.xlu1 %v3244_v34, %s3001_s6  ;;  %744 = vrot.lane.b32.xlu0 %v3247_v35, %s3001_s6 }
  0xba   : > { %v374_v60 = vpop.permute.xlu1 %373  ;;  %v372_v61 = vpop.permute.xlu0 %371 }
  0xbb   : > { %447 = vst.msk [vmem:[#allocation2 + $0xb8] sm:$0xff] %vm423_vm1, %v374_v60  ;;  %446 = vst.msk [vmem:[#allocation2 + $0xb0] sm:$0xff] %vm423_vm1, %v372_v61 }
  0xbc   : > { %750 = vrot.lane.b32.xlu1 %v3254_v36, %s3001_s6  ;;  %748 = vrot.lane.b32.xlu0 %v3257_v37, %s3001_s6 }
  0xbe   : > { %v378_v12 = vpop.permute.xlu1 %377  ;;  %v376_v16 = vpop.permute.xlu0 %375 }
  0xbf   : > { %449 = vst.msk [vmem:[#allocation2 + $0xc8] sm:$0xff] %vm423_vm1, %v378_v12  ;;  %448 = vst.msk [vmem:[#allocation2 + $0xc0] sm:$0xff] %vm423_vm1, %v376_v16 }
  0xc0   : > { %909 = vrot.lane.b32.xlu1 %v3094_v0, %s3002_s7  ;;  %752 = vrot.lane.b32.xlu0 %v3269_v39, %s3001_s6  ;;  %v1849_v0 = vld [vmem:[%s4212_s1 + $0x20] sm:$0xf] }
  0xc1   : > { %2752 = vmatprep.subr.msk.mxu0 %vm1947_vm2, %v1849_v0  ;;  %2810 = vmatprep.subr.msk.mxu1 %vm1947_vm2, %v1849_v0 }
  0xc2   : > { %v382_v62 = vpop.permute.xlu1 %381  ;;  %v380_v63 = vpop.permute.xlu0 %379  ;;  %2753 = vmatpush3.msk.msra.mxu0 %vm1947_vm2, %v1849_v0  ;;  %2815 = vmatpush3.msk.msra.mxu1 %vm1947_vm2, %v1849_v0 }
  0xc3   : > { %451 = vst.msk [vmem:[#allocation2 + $0xd8] sm:$0xff] %vm423_vm1, %v382_v62  ;;  %450 = vst.msk [vmem:[#allocation2 + $0xd0] sm:$0xff] %vm423_vm1, %v380_v63  ;;  %2754 = vmatprep.subr.mxu0 %v1848_v1  ;;  %2811 = vmatprep.subr.mxu1 %v1848_v1 }
  0xc4   : > { %1102 = vrot.lane.b32.xlu1 %v3343_v17, %s3003_s8  ;;  %911 = vrot.lane.b32.xlu0 %v3101_v2, %s3002_s7 }
  0xc5   : > { %2755 = vmatpush3.msra.mxu0 %v1848_v1  ;;  %2816 = vmatpush3.msra.mxu1 %v1848_v1 }
  0xc6   : > { %v386_v56 = vpop.permute.xlu1 %385  ;;  %v384_v57 = vpop.permute.xlu0 %383 }
  0xc7   : > { %453 = vst.msk [vmem:[#allocation2 + $0xe8] sm:$0xff] %vm423_vm1, %v386_v56  ;;  %452 = vst.msk [vmem:[#allocation2 + $0xe0] sm:$0xff] %vm423_vm1, %v384_v57 }
  0xc8   : > { %1298 = vrot.lane.b32.xlu1 %v3174_v20, %s3004_s9  ;;  %1104 = vrot.lane.b32.xlu0 %v3340_v13, %s3003_s8  ;;  %v1847_v20 = vld [vmem:[%s4212_s1 + $0x10] sm:$0xff] }
  0xc9   : > { %2756 = vmatprep.subr.mxu0 %v1847_v20  ;;  %2812 = vmatprep.subr.mxu1 %v1847_v20 }
  0xca   : > { %v390_v2 = vpop.permute.xlu1 %389  ;;  %v388_v17 = vpop.permute.xlu0 %387  ;;  %2757 = vmatpush3.msra.mxu0 %v1847_v20  ;;  %2817 = vmatpush3.msra.mxu1 %v1847_v20 }
  0xcb   : > { %455 = vst.msk [vmem:[#allocation2 + $0xf8] sm:$0xff] %vm423_vm1, %v390_v2  ;;  %454 = vst.msk [vmem:[#allocation2 + $0xf0] sm:$0xff] %vm423_vm1, %v388_v17  ;;  %2758 = vmatprep.subr.mxu0 %v1846_v58  ;;  %2813 = vmatprep.subr.mxu1 %v1846_v58 }
  0xcc   : > { %1491 = vrot.lane.b32.xlu1 %v3111_v5, %s3005_s21  ;;  %1300 = vrot.lane.b32.xlu0 %v3171_v19, %s3004_s9  ;;  %v1845_v19 = vld [vmem:[%s4212_s1] sm:$0xff] }
  0xcd   : > { %2759 = vmatpush3.msra.mxu0 %v1846_v58  ;;  %2818 = vmatpush3.msra.mxu1 %v1846_v58 }
  0xce   : > { %v523_v13 = vpop.permute.xlu1 %522  ;;  %v521_v3 = vpop.permute.xlu0 %520  ;;  %2760 = vmatprep.subr.mxu0 %v1845_v19  ;;  %2814 = vmatprep.subr.mxu1 %v1845_v19 }
  0xcf   : > { %618 = vst.msk [vmem:[#allocation2 + $0x8] sm:$0xff] %vm616_vm3, %v523_v13  ;;  %617 = vst.msk [vmem:[#allocation2] sm:$0xff] %vm616_vm3, %v521_v3  ;;  %2761 = vmatpush3.msra.mxu0 %v1845_v19  ;;  %2819 = vmatpush3.msra.mxu1 %v1845_v19 }
  0xd0   : > { %1493 = vrot.lane.b32.xlu1 %v3108_v4, %s3005_s21  ;;  %913 = vrot.lane.b32.xlu0 %v3111_v5, %s3002_s7 }
  0xd2   : > { %v527_v59 = vpop.permute.xlu1 %526  ;;  %v525_v60 = vpop.permute.xlu0 %524 }
  0xd3   : > { %620 = vst.msk [vmem:[#allocation2 + $0x18] sm:$0xff] %vm616_vm3, %v527_v59  ;;  %619 = vst.msk [vmem:[#allocation2 + $0x10] sm:$0xff] %vm616_vm3, %v525_v60 }
  0xd4   : > { %915 = vrot.lane.b32.xlu1 %v3108_v4, %s3002_s7  ;;  %1684 = vrot.lane.b32.xlu0 %v3353_v30, %s3006_s10 }
  0xd6   : > { %v531_v5 = vpop.permute.xlu1 %530  ;;  %v529_v61 = vpop.permute.xlu0 %528 }
  0xd7   : > { %622 = vst.msk [vmem:[#allocation2 + $0x28] sm:$0xff] %vm616_vm3, %v531_v5  ;;  %621 = vst.msk [vmem:[#allocation2 + $0x20] sm:$0xff] %vm616_vm3, %v529_v61 }
  0xd8   : > { %1686 = vrot.lane.b32.xlu1 %v3350_v29, %s3006_s10  ;;  %1106 = vrot.lane.b32.xlu0 %v3353_v30, %s3003_s8 }
  0xda   : > { %v535_v12 = vpop.permute.xlu1 %534  ;;  %v533_v4 = vpop.permute.xlu0 %532 }
  0xdb   : > { %624 = vst.msk [vmem:[#allocation2 + $0x38] sm:$0xff] %vm616_vm3, %v535_v12  ;;  %623 = vst.msk [vmem:[#allocation2 + $0x30] sm:$0xff] %vm616_vm3, %v533_v4 }
  0xdc   : > { %1302 = vrot.lane.b32.xlu1 %v3193_v23, %s3004_s9  ;;  %1108 = vrot.lane.b32.xlu0 %v3350_v29, %s3003_s8 }
  0xde   : > { %v539_v16 = vpop.permute.xlu1 %538  ;;  %v537_v62 = vpop.permute.xlu0 %536 }
  0xdf   : > { %626 = vst.msk [vmem:[#allocation2 + $0x48] sm:$0xff] %vm616_vm3, %v539_v16  ;;  %625 = vst.msk [vmem:[#allocation2 + $0x40] sm:$0xff] %vm616_vm3, %v537_v62  ;;  %v2622_v16 = vld [vmem:[%s3091_s30 + $0xc1] sm:$0xff] }
  0xe0   : > { %1495 = vrot.lane.b32.xlu1 %v3121_v7, %s3005_s21  ;;  %1304 = vrot.lane.b32.xlu0 %v3188_v22, %s3004_s9 }
  0xe2   : > { %v543_v30 = vpop.permute.xlu1 %542  ;;  %v541_v63 = vpop.permute.xlu0 %540 }
  0xe3   : > { %628 = vst.msk [vmem:[#allocation2 + $0x58] sm:$0xff] %vm616_vm3, %v543_v30  ;;  %627 = vst.msk [vmem:[#allocation2 + $0x50] sm:$0xff] %vm616_vm3, %v541_v63 }
  0xe4   : > { %1497 = vrot.lane.b32.xlu1 %v3118_v6, %s3005_s21  ;;  %917 = vrot.lane.b32.xlu0 %v3121_v7, %s3002_s7 }
  0xe6   : > { %v547_v23 = vpop.permute.xlu1 %546  ;;  %v545_v29 = vpop.permute.xlu0 %544 }
  0xe7   : > { %630 = vst.msk [vmem:[#allocation2 + $0x68] sm:$0xff] %vm616_vm3, %v547_v23  ;;  %629 = vst.msk [vmem:[#allocation2 + $0x60] sm:$0xff] %vm616_vm3, %v545_v29 }
  0xe8   : > { %919 = vrot.lane.b32.xlu1 %v3118_v6, %s3002_s7  ;;  %1688 = vrot.lane.b32.xlu0 %v3363_v43, %s3006_s10 }
  0xea   : > { %v551_v22 = vpop.permute.xlu1 %550  ;;  %v549_v56 = vpop.permute.xlu0 %548 }
  0xeb   : > { %632 = vst.msk [vmem:[#allocation2 + $0x78] sm:$0xff] %vm616_vm3, %v551_v22  ;;  %631 = vst.msk [vmem:[#allocation2 + $0x70] sm:$0xff] %vm616_vm3, %v549_v56  ;;  %v2561_v56 = vld [vmem:[%s3091_s30 + $0xca] sm:$0xff] }
  0xec   : > { %1690 = vrot.lane.b32.xlu1 %v3360_v42, %s3006_s10  ;;  %1110 = vrot.lane.b32.xlu0 %v3363_v43, %s3003_s8 }
  0xee   : > { %v555_v7 = vpop.permute.xlu1 %554  ;;  %v553_v57 = vpop.permute.xlu0 %552 }
  0xef   : > { %634 = vst.msk [vmem:[#allocation2 + $0x88] sm:$0xff] %vm616_vm3, %v555_v7  ;;  %633 = vst.msk [vmem:[#allocation2 + $0x80] sm:$0xff] %vm616_vm3, %v553_v57 }
  0xf0   : > { %1306 = vrot.lane.b32.xlu1 %v3199_v25, %s3004_s9  ;;  %1112 = vrot.lane.b32.xlu0 %v3360_v42, %s3003_s8 }
  0xf2   : > { %v559_v6 = vpop.permute.xlu1 %558  ;;  %v557_v0 = vpop.permute.xlu0 %556 }
  0xf3   : > { %636 = vst.msk [vmem:[#allocation2 + $0x98] sm:$0xff] %vm616_vm3, %v559_v6  ;;  %635 = vst.msk [vmem:[#allocation2 + $0x90] sm:$0xff] %vm616_vm3, %v557_v0 }
  0xf4   : > { %1499 = vrot.lane.b32.xlu1 %v3131_v9, %s3005_s21  ;;  %1308 = vrot.lane.b32.xlu0 %v3196_v24, %s3004_s9 }
  0xf6   : > { %v563_v43 = vpop.permute.xlu1 %562  ;;  %v561_v2 = vpop.permute.xlu0 %560 }
  0xf7   : > { %638 = vst.msk [vmem:[#allocation2 + $0xa8] sm:$0xff] %vm616_vm3, %v563_v43  ;;  %637 = vst.msk [vmem:[#allocation2 + $0xa0] sm:$0xff] %vm616_vm3, %v561_v2  ;;  %v2625_v43 = vld [vmem:[%s3091_s30 + $0xe1] sm:$0xff] }
  0xf8   : > { %1501 = vrot.lane.b32.xlu1 %v3128_v8, %s3005_s21  ;;  %921 = vrot.lane.b32.xlu0 %v3131_v9, %s3002_s7 }
  0xfa   : > { %v567_v25 = vpop.permute.xlu1 %566  ;;  %v565_v42 = vpop.permute.xlu0 %564 }
  0xfb   : > { %640 = vst.msk [vmem:[#allocation2 + $0xb8] sm:$0xff] %vm616_vm3, %v567_v25  ;;  %639 = vst.msk [vmem:[#allocation2 + $0xb0] sm:$0xff] %vm616_vm3, %v565_v42 }
  0xfc   : > { %923 = vrot.lane.b32.xlu1 %v3128_v8, %s3002_s7  ;;  %1692 = vrot.lane.b32.xlu0 %v3373_v47, %s3006_s10 }
  0xfe   : > { %v571_v24 = vpop.permute.xlu1 %570  ;;  %v569_v17 = vpop.permute.xlu0 %568 }
  0xff   : > { %642 = vst.msk [vmem:[#allocation2 + $0xc8] sm:$0xff] %vm616_vm3, %v571_v24  ;;  %641 = vst.msk [vmem:[#allocation2 + $0xc0] sm:$0xff] %vm616_vm3, %v569_v17 }
 0x100   : > { %1694 = vrot.lane.b32.xlu1 %v3370_v46, %s3006_s10  ;;  %1114 = vrot.lane.b32.xlu0 %v3373_v47, %s3003_s8 }
 0x102   : > { %v575_v9 = vpop.permute.xlu1 %574  ;;  %v573_v1 = vpop.permute.xlu0 %572 }
 0x103   : > { %644 = vst.msk [vmem:[#allocation2 + $0xd8] sm:$0xff] %vm616_vm3, %v575_v9  ;;  %643 = vst.msk [vmem:[#allocation2 + $0xd0] sm:$0xff] %vm616_vm3, %v573_v1 }
 0x104   : > { %1310 = vrot.lane.b32.xlu1 %v3211_v27, %s3004_s9  ;;  %1116 = vrot.lane.b32.xlu0 %v3370_v46, %s3003_s8 }
 0x106   : > { %v579_v8 = vpop.permute.xlu1 %578  ;;  %v577_v20 = vpop.permute.xlu0 %576 }
 0x107   : > { %646 = vst.msk [vmem:[#allocation2 + $0xe8] sm:$0xff] %vm616_vm3, %v579_v8  ;;  %645 = vst.msk [vmem:[#allocation2 + $0xe0] sm:$0xff] %vm616_vm3, %v577_v20 }
 0x108   : > { %1503 = vrot.lane.b32.xlu1 %v3141_v11, %s3005_s21  ;;  %1312 = vrot.lane.b32.xlu0 %v3208_v26, %s3004_s9 }
 0x10a   : > { %v583_v47 = vpop.permute.xlu1 %582  ;;  %v581_v13 = vpop.permute.xlu0 %580 }
 0x10b   : > { %648 = vst.msk [vmem:[#allocation2 + $0xf8] sm:$0xff] %vm616_vm3, %v583_v47  ;;  %647 = vst.msk [vmem:[#allocation2 + $0xf0] sm:$0xff] %vm616_vm3, %v581_v13  ;;  %v2626_v13 = vld [vmem:[%s3091_s30 + $0xf1] sm:$0xff] }
 0x10c   : > { %1505 = vrot.lane.b32.xlu1 %v3138_v10, %s3005_s21  ;;  %925 = vrot.lane.b32.xlu0 %v3141_v11, %s3002_s7 }
 0x10e   : > { %v719_v27 = vpop.permute.xlu1 %718  ;;  %v717_v46 = vpop.permute.xlu0 %716 }
 0x10f   : > { %814 = vst.msk [vmem:[#allocation2 + $0x8] sm:$0xff] %vm812_vm4, %v719_v27  ;;  %813 = vst.msk [vmem:[#allocation2] sm:$0xff] %vm812_vm4, %v717_v46 }
 0x110   : > { %927 = vrot.lane.b32.xlu1 %v3138_v10, %s3002_s7  ;;  %1696 = vrot.lane.b32.xlu0 %v3383_v49, %s3006_s10 }
 0x112   : > { %v723_v26 = vpop.permute.xlu1 %722  ;;  %v721_v3 = vpop.permute.xlu0 %720 }
 0x113   : > { %816 = vst.msk [vmem:[#allocation2 + $0x18] sm:$0xff] %vm812_vm4, %v723_v26  ;;  %815 = vst.msk [vmem:[#allocation2 + $0x10] sm:$0xff] %vm812_vm4, %v721_v3 }
 0x114   : > { %1698 = vrot.lane.b32.xlu1 %v3380_v48, %s3006_s10  ;;  %1118 = vrot.lane.b32.xlu0 %v3383_v49, %s3003_s8 }
 0x116   : > { %v727_v11 = vpop.permute.xlu1 %726  ;;  %v725_v58 = vpop.permute.xlu0 %724 }
 0x117   : > { %818 = vst.msk [vmem:[#allocation2 + $0x28] sm:$0xff] %vm812_vm4, %v727_v11  ;;  %817 = vst.msk [vmem:[#allocation2 + $0x20] sm:$0xff] %vm812_vm4, %v725_v58  ;;  %v2658_v11 = vld [vmem:[%s3091_s30 + $0xf2] sm:$0xff] }
 0x118   : > { %1314 = vrot.lane.b32.xlu1 %v3225_v31, %s3004_s9  ;;  %1120 = vrot.lane.b32.xlu0 %v3380_v48, %s3003_s8 }
 0x11a   : > { %v731_v10 = vpop.permute.xlu1 %730  ;;  %v729_v19 = vpop.permute.xlu0 %728 }
 0x11b   : > { %820 = vst.msk [vmem:[#allocation2 + $0x38] sm:$0xff] %vm812_vm4, %v731_v10  ;;  %819 = vst.msk [vmem:[#allocation2 + $0x30] sm:$0xff] %vm812_vm4, %v729_v19 }
 0x11c   : > { %1507 = vrot.lane.b32.xlu1 %v3155_v15, %s3005_s21  ;;  %1316 = vrot.lane.b32.xlu0 %v3214_v28, %s3004_s9 }
 0x11e   : > { %v735_v49 = vpop.permute.xlu1 %734  ;;  %v733_v59 = vpop.permute.xlu0 %732 }
 0x11f   : > { %822 = vst.msk [vmem:[#allocation2 + $0x48] sm:$0xff] %vm812_vm4, %v735_v49  ;;  %821 = vst.msk [vmem:[#allocation2 + $0x40] sm:$0xff] %vm812_vm4, %v733_v59 }
 0x120   : > { %1509 = vrot.lane.b32.xlu1 %v3152_v14, %s3005_s21  ;;  %929 = vrot.lane.b32.xlu0 %v3155_v15, %s3002_s7 }
 0x122   : > { %v739_v31 = vpop.permute.xlu1 %738  ;;  %v737_v48 = vpop.permute.xlu0 %736 }
 0x123   : > { %824 = vst.msk [vmem:[#allocation2 + $0x58] sm:$0xff] %vm812_vm4, %v739_v31  ;;  %823 = vst.msk [vmem:[#allocation2 + $0x50] sm:$0xff] %vm812_vm4, %v737_v48 }
 0x124   : > { %931 = vrot.lane.b32.xlu1 %v3152_v14, %s3002_s7  ;;  %1700 = vrot.lane.b32.xlu0 %v3393_v51, %s3006_s10 }
 0x126   : > { %v743_v28 = vpop.permute.xlu1 %742  ;;  %v741_v60 = vpop.permute.xlu0 %740 }
 0x127   : > { %826 = vst.msk [vmem:[#allocation2 + $0x68] sm:$0xff] %vm812_vm4, %v743_v28  ;;  %825 = vst.msk [vmem:[#allocation2 + $0x60] sm:$0xff] %vm812_vm4, %v741_v60 }
 0x128   : > { %1702 = vrot.lane.b32.xlu1 %v3390_v50, %s3006_s10  ;;  %1122 = vrot.lane.b32.xlu0 %v3393_v51, %s3003_s8 }
 0x12a   : > { %v747_v15 = vpop.permute.xlu1 %746  ;;  %v745_v5 = vpop.permute.xlu0 %744 }
 0x12b   : > { %828 = vst.msk [vmem:[#allocation2 + $0x78] sm:$0xff] %vm812_vm4, %v747_v15  ;;  %827 = vst.msk [vmem:[#allocation2 + $0x70] sm:$0xff] %vm812_vm4, %v745_v5  ;;  %v2628_v5 = vld [vmem:[%s3091_s30 + $0x109] sm:$0xff] }
 0x12c   : > { %1318 = vrot.lane.b32.xlu1 %v3231_v33, %s3004_s9  ;;  %1124 = vrot.lane.b32.xlu0 %v3390_v50, %s3003_s8 }
 0x12e   : > { %v751_v14 = vpop.permute.xlu1 %750  ;;  %v749_v61 = vpop.permute.xlu0 %748 }
 0x12f   : > { %830 = vst.msk [vmem:[#allocation2 + $0x88] sm:$0xff] %vm812_vm4, %v751_v14  ;;  %829 = vst.msk [vmem:[#allocation2 + $0x80] sm:$0xff] %vm812_vm4, %v749_v61 }
 0x130   : > { %1511 = vrot.lane.b32.xlu1 %v3181_v21, %s3005_s21  ;;  %1320 = vrot.lane.b32.xlu0 %v3228_v32, %s3004_s9 }
 0x132   : > { %v910_v51 = vpop.permute.xlu1 %909  ;;  %v753_v12 = vpop.permute.xlu0 %752 }
 0x133   : > { %1006 = vst.msk [vmem:[#allocation2] sm:$0xff] %vm1005_vm5, %v910_v51 }
 0x134   : > { %831 = vst.msk [vmem:[#allocation2 + $0x90] sm:$0xff] %vm812_vm4, %v753_v12  ;;  %1513 = vrot.lane.b32.xlu1 %v3167_v18, %s3005_s21  ;;  %933 = vrot.lane.b32.xlu0 %v3181_v21, %s3002_s7 }
 0x136   : > { %v1103_v33 = vpop.permute.xlu1 %1102  ;;  %v912_v50 = vpop.permute.xlu0 %911 }
 0x137   : > { %1199 = vst.msk [vmem:[#allocation2] sm:$0xff] %vm1198_vm6, %v1103_v33  ;;  %v2660_v33 = vld [vmem:[%s3091_s30 + $0x10a] sm:$0xff] }
 0x138   : > { %1007 = vst.msk [vmem:[#allocation2 + $0x8] sm:$0xff] %vm1005_vm5, %v912_v50  ;;  %935 = vrot.lane.b32.xlu1 %v3167_v18, %s3002_s7  ;;  %1704 = vrot.lane.b32.xlu0 %v3403_v53, %s3006_s10 }
 0x13a   : > { %v1299_v32 = vpop.permute.xlu1 %1298  ;;  %v1105_v4 = vpop.permute.xlu0 %1104 }
 0x13b   : > { %1395 = vst.msk [vmem:[#allocation2] sm:$0xff] %vm1394_vm7, %v1299_v32 }
 0x13c   : > { %1200 = vst.msk [vmem:[#allocation2 + $0x8] sm:$0xff] %vm1198_vm6, %v1105_v4  ;;  %1706 = vrot.lane.b32.xlu1 %v3400_v52, %s3006_s10  ;;  %1126 = vrot.lane.b32.xlu0 %v3403_v53, %s3003_s8  ;;  %v2623_v53 = vld [vmem:[%s3091_s30 + $0xc9] sm:$0xff] }
 0x13e   : > { %v1492_v18 = vpop.permute.xlu1 %1491  ;;  %v1301_v21 = vpop.permute.xlu0 %1300 }
 0x13f   : > { %1588 = vst.msk [vmem:[#allocation2] sm:$0xff] %vm1587_vm8, %v1492_v18 }
 0x140   : > { %1396 = vst.msk [vmem:[#allocation2 + $0x8] sm:$0xff] %vm1394_vm7, %v1301_v21  ;;  %1322 = vrot.lane.b32.xlu1 %v3247_v35, %s3004_s9  ;;  %1128 = vrot.lane.b32.xlu0 %v3400_v52, %s3003_s8 }
 0x142   : > { %v1494_v62 = vpop.permute.xlu1 %1493  ;;  %v914_v30 = vpop.permute.xlu0 %913 }
 0x143   : > { %1589 = vst.msk [vmem:[#allocation2 + $0x8] sm:$0xff] %vm1587_vm8, %v1494_v62 }
 0x144   : > { %1008 = vst.msk [vmem:[#allocation2 + $0x10] sm:$0xff] %vm1005_vm5, %v914_v30  ;;  %1515 = vrot.lane.b32.xlu1 %v2622_v16, %s3005_s21  ;;  %1324 = vrot.lane.b32.xlu0 %v3244_v34, %s3004_s9 }
 0x146   : > { %v916_v63 = vpop.permute.xlu1 %915  ;;  %v1685_v23 = vpop.permute.xlu0 %1684 }
 0x147   : > { %1009 = vst.msk [vmem:[#allocation2 + $0x18] sm:$0xff] %vm1005_vm5, %v916_v63 }
 0x148   : > { %1781 = vst.msk [vmem:[#allocation2] sm:$0xff] %vm1780_vm9, %v1685_v23  ;;  %1517 = vrot.lane.b32.xlu1 %v2623_v53, %s3005_s21  ;;  %937 = vrot.lane.b32.xlu0 %v2622_v16, %s3002_s7  ;;  %v2661_v16 = vld [vmem:[%s3091_s30 + $0x112] sm:$0xff]  ;;  %v2630_v23 = vld [vmem:[%s3091_s30 + $0x121] sm:$0xff] }
 0x14a   : > { %v1687_v35 = vpop.permute.xlu1 %1686  ;;  %v1107_v52 = vpop.permute.xlu0 %1106 }
 0x14b   : > { %1782 = vst.msk [vmem:[#allocation2 + $0x8] sm:$0xff] %vm1780_vm9, %v1687_v35 }
 0x14c   : > { %1201 = vst.msk [vmem:[#allocation2 + $0x10] sm:$0xff] %vm1198_vm6, %v1107_v52  ;;  %939 = vrot.lane.b32.xlu1 %v2623_v53, %s3002_s7  ;;  %1708 = vrot.lane.b32.xlu0 %v3413_v55, %s3006_s10 }
 0x14e   : > { %v1303_v34 = vpop.permute.xlu1 %1302  ;;  %v1109_v29 = vpop.permute.xlu0 %1108 }
 0x14f   : > { %v1813_v22 = vld [vmem:[#allocation2] sm:$0xff]  ;;  %1397 = vst.msk [vmem:[#allocation2 + $0x10] sm:$0xff] %vm1394_vm7, %v1303_v34  ;;  %v2505_v34 = vld [vmem:[%s3091_s30 + $0x128] sm:$0xff] }
 0x150   : > { %1202 = vst.msk [vmem:[#allocation2 + $0x18] sm:$0xff] %vm1198_vm6, %v1109_v29  ;;  %2762 = vmatprep.mubr.msk.f32.mxu0 %vm1850_vm10, %v1813_v22  ;;  %1710 = vrot.lane.b32.xlu1 %v3410_v54, %s3006_s10  ;;  %v2624_v54 = vld [vmem:[%s3091_s30 + $0xd9] sm:$0xff] }
 0x151   : > { %1130 = vrot.lane.b32.xlu0 %v3413_v55, %s3003_s8 }
 0x152   : > { %v1496_v7 = vpop.permute.xlu1 %1495  ;;  %v1305_v57 = vpop.permute.xlu0 %1304  ;;  %v1814_v6 = vld [vmem:[#allocation2 + $0x8] sm:$0xff] }
 0x153   : > { %1590 = vst.msk [vmem:[#allocation2 + $0x10] sm:$0xff] %vm1587_vm8, %v1496_v7  ;;  %2763 = vmatmul.mubr.msk.f32.vlgmr.msra.gmra.mxu0 %vm1850_vm10, %v1814_v6  ;;  %v2662_v7 = vld [vmem:[%s3091_s30 + $0x122] sm:$0xff] }
 0x154   : > { %1398 = vst.msk [vmem:[#allocation2 + $0x18] sm:$0xff] %vm1394_vm7, %v1305_v57  ;;  %1326 = vrot.lane.b32.xlu1 %v3257_v37, %s3004_s9  ;;  %v2656_v37 = vld [vmem:[%s3091_s30 + $0xda] sm:$0xff] }
 0x155   : > { %1132 = vrot.lane.b32.xlu0 %v2561_v56, %s3003_s8 }
 0x156   : > { %v1498_v0 = vpop.permute.xlu1 %1497  ;;  %v918_v55 = vpop.permute.xlu0 %917 }
 0x157   : > { %1591 = vst.msk [vmem:[#allocation2 + $0x18] sm:$0xff] %vm1587_vm8, %v1498_v0 }
 0x158   : > { %1010 = vst.msk [vmem:[#allocation2 + $0x20] sm:$0xff] %vm1005_vm5, %v918_v55  ;;  %1519 = vrot.lane.b32.xlu1 %v2624_v54, %s3005_s21  ;;  %v2663_v55 = vld [vmem:[%s3091_s30 + $0x12a] sm:$0xff] }
 0x159   : > { %1328 = vrot.lane.b32.xlu0 %v3254_v36, %s3004_s9  ;;  %v2657_v36 = vld [vmem:[%s3091_s30 + $0xe2] sm:$0xff] }
 0x15a   : > { %v920_v2 = vpop.permute.xlu1 %919  ;;  %v1689_v25 = vpop.permute.xlu0 %1688 }
 0x15b   : > { %1011 = vst.msk [vmem:[#allocation2 + $0x28] sm:$0xff] %vm1005_vm5, %v920_v2 }
 0x15c   : > { %1783 = vst.msk [vmem:[#allocation2 + $0x10] sm:$0xff] %vm1780_vm9, %v1689_v25  ;;  %1521 = vrot.lane.b32.xlu1 %v2625_v43, %s3005_s21  ;;  %v2600_v25 = vld [vmem:[%s3091_s30 + $0x138] sm:$0xff] }
 0x15d   : > { %941 = vrot.lane.b32.xlu0 %v2624_v54, %s3002_s7 }
 0x15e   : > { %v1691_v42 = vpop.permute.xlu1 %1690  ;;  %v1111_v24 = vpop.permute.xlu0 %1110 }
 0x15f   : > { %1784 = vst.msk [vmem:[#allocation2 + $0x18] sm:$0xff] %vm1780_vm9, %v1691_v42 }
 0x160   : > { %1203 = vst.msk [vmem:[#allocation2 + $0x20] sm:$0xff] %vm1198_vm6, %v1111_v24  ;;  %943 = vrot.lane.b32.xlu1 %v2625_v43, %s3002_s7  ;;  %v2601_v24 = vld [vmem:[%s3091_s30 + $0x140] sm:$0xff] }
 0x161   : > { %1712 = vrot.lane.b32.xlu0 %v2656_v37, %s3006_s10 }
 0x162   : > { %v1307_v17 = vpop.permute.xlu1 %1306  ;;  %v1113_v9 = vpop.permute.xlu0 %1112 }
 0x163   : > { %v1815_v1 = vld [vmem:[#allocation2 + $0x10] sm:$0xff]  ;;  %1399 = vst.msk [vmem:[#allocation2 + $0x20] sm:$0xff] %vm1394_vm7, %v1307_v17 }
 0x164   : > { %1204 = vst.msk [vmem:[#allocation2 + $0x28] sm:$0xff] %vm1198_vm6, %v1113_v9  ;;  %2765 = vmatprep.mubr.msk.f32.mxu0 %vm1850_vm10, %v1815_v1  ;;  %1714 = vrot.lane.b32.xlu1 %v2657_v36, %s3006_s10 }
 0x165   : > { %1134 = vrot.lane.b32.xlu0 %v2656_v37, %s3003_s8 }
 0x166   : > { %v1500_v8 = vpop.permute.xlu1 %1499  ;;  %v1309_v20 = vpop.permute.xlu0 %1308  ;;  %v1816_v47 = vld [vmem:[#allocation2 + $0x18] sm:$0xff] }
 0x167   : > { %1592 = vst.msk [vmem:[#allocation2 + $0x20] sm:$0xff] %vm1587_vm8, %v1500_v8  ;;  %2766 = vmatmul.mubr.msk.f32.gmra.mxu0 %vm1850_vm10, %v1816_v47 }
 0x168   : > { %1400 = vst.msk [vmem:[#allocation2 + $0x28] sm:$0xff] %vm1394_vm7, %v1309_v20  ;;  %1330 = vrot.lane.b32.xlu1 %v3269_v39, %s3004_s9  ;;  %v2627_v39 = vld [vmem:[%s3091_s30 + $0xf9] sm:$0xff] }
 0x169   : > { %1136 = vrot.lane.b32.xlu0 %v2657_v36, %s3003_s8  ;;  %v2632_v36 = vld [vmem:[%s3091_s30 + $0x139] sm:$0xff] }
 0x16a   : > { %v1502_v27 = vpop.permute.xlu1 %1501  ;;  %v922_v46 = vpop.permute.xlu0 %921 }
 0x16b   : > { %1593 = vst.msk [vmem:[#allocation2 + $0x28] sm:$0xff] %vm1587_vm8, %v1502_v27  ;;  %v2664_v27 = vld [vmem:[%s3091_s30 + $0x13a] sm:$0xff] }
 0x16c   : > { %1012 = vst.msk [vmem:[#allocation2 + $0x30] sm:$0xff] %vm1005_vm5, %v922_v46  ;;  %1523 = vrot.lane.b32.xlu1 %v2626_v13, %s3005_s21 }
 0x16d   : > { %1332 = vrot.lane.b32.xlu0 %v3260_v38, %s3004_s9 }
 0x16e   : > { %v924_v26 = vpop.permute.xlu1 %923  ;;  %v1693_v3 = vpop.permute.xlu0 %1692 }
 0x16f   : > { %1013 = vst.msk [vmem:[#allocation2 + $0x38] sm:$0xff] %vm1005_vm5, %v924_v26 }
 0x170   : > { %1785 = vst.msk [vmem:[#allocation2 + $0x20] sm:$0xff] %vm1780_vm9, %v1693_v3  ;;  %945 = vrot.lane.b32.xlu1 %v2626_v13, %s3002_s7  ;;  %v2633_v13 = vld [vmem:[%s3091_s30 + $0x141] sm:$0xff] }
 0x171   : > { %754 = vrot.lane.b32.xlu0 %v3260_v38, %s3001_s6  ;;  %v2659_v38 = vld [vmem:[%s3091_s30 + $0xfa] sm:$0xff] }
 0x172   : > { %v1695_v58 = vpop.permute.xlu1 %1694  ;;  %v1115_v10 = vpop.permute.xlu0 %1114 }
 0x173   : > { %1786 = vst.msk [vmem:[#allocation2 + $0x28] sm:$0xff] %vm1780_vm9, %v1695_v58 }
 0x174   : > { %1205 = vst.msk [vmem:[#allocation2 + $0x30] sm:$0xff] %vm1198_vm6, %v1115_v10  ;;  %1716 = vrot.lane.b32.xlu1 %v2658_v11, %s3006_s10 }
 0x175   : > { %1525 = vrot.lane.b32.xlu0 %v2627_v39, %s3005_s21 }
 0x176   : > { %v1311_v19 = vpop.permute.xlu1 %1310  ;;  %v1117_v49 = vpop.permute.xlu0 %1116 }
 0x177   : > { %v1817_v59 = vld [vmem:[#allocation2 + $0x20] sm:$0xff]  ;;  %1401 = vst.msk [vmem:[#allocation2 + $0x30] sm:$0xff] %vm1394_vm7, %v1311_v19  ;;  %v2602_v19 = vld [vmem:[%s3091_s30 + $0x150] sm:$0xff] }
 0x178   : > { %1206 = vst.msk [vmem:[#allocation2 + $0x38] sm:$0xff] %vm1198_vm6, %v1117_v49  ;;  %2768 = vmatprep.mubr.msk.f32.mxu0 %vm1850_vm10, %v1817_v59  ;;  %1138 = vrot.lane.b32.xlu1 %v2658_v11, %s3003_s8  ;;  %v2665_v11 = vld [vmem:[%s3091_s30 + $0x142] sm:$0xff] }
 0x179   : > { %947 = vrot.lane.b32.xlu0 %v2627_v39, %s3002_s7 }
 0x17a   : > { %v1504_v31 = vpop.permute.xlu1 %1503  ;;  %v1313_v48 = vpop.permute.xlu0 %1312  ;;  %v1818_v28 = vld [vmem:[#allocation2 + $0x28] sm:$0xff] }
 0x17b   : > { %1594 = vst.msk [vmem:[#allocation2 + $0x30] sm:$0xff] %vm1587_vm8, %v1504_v31  ;;  %2769 = vmatmul.mubr.msk.f32.gmra.mxu0 %vm1850_vm10, %v1818_v28  ;;  %v2603_v31 = vld [vmem:[%s3091_s30 + $0x158] sm:$0xff] }
 0x17c   : > { %1402 = vst.msk [vmem:[#allocation2 + $0x38] sm:$0xff] %vm1394_vm7, %v1313_v48  ;;  %1140 = vrot.lane.b32.xlu1 %v2659_v38, %s3003_s8  ;;  %v2634_v48 = vld [vmem:[%s3091_s30 + $0x151] sm:$0xff] }
 0x17d   : > { %1718 = vrot.lane.b32.xlu0 %v2659_v38, %s3006_s10 }
 0x17e   : > { %v1506_v60 = vpop.permute.xlu1 %1505  ;;  %v926_v15 = vpop.permute.xlu0 %925 }
 0x17f   : > { %1595 = vst.msk [vmem:[#allocation2 + $0x38] sm:$0xff] %vm1587_vm8, %v1506_v60 }
 0x180   : > { %1014 = vst.msk [vmem:[#allocation2 + $0x40] sm:$0xff] %vm1005_vm5, %v926_v15  ;;  %756 = vrot.lane.b32.xlu1 %v3275_v41, %s3001_s6 }
 0x181   : > { %1334 = vrot.lane.b32.xlu0 %v3275_v41, %s3004_s9  ;;  %v2629_v41 = vld [vmem:[%s3091_s30 + $0x111] sm:$0xff] }
 0x182   : > { %v928_v14 = vpop.permute.xlu1 %927  ;;  %v1697_v61 = vpop.permute.xlu0 %1696 }
 0x183   : > { %1015 = vst.msk [vmem:[#allocation2 + $0x48] sm:$0xff] %vm1005_vm5, %v928_v14 }
 0x184   : > { %1787 = vst.msk [vmem:[#allocation2 + $0x30] sm:$0xff] %vm1780_vm9, %v1697_v61  ;;  %1527 = vrot.lane.b32.xlu1 %v2628_v5, %s3005_s21  ;;  %v2635_v61 = vld [vmem:[%s3091_s30 + $0x159] sm:$0xff] }
 0x185   : > { %1336 = vrot.lane.b32.xlu0 %v3272_v40, %s3004_s9 }
 0x186   : > { %v1699_v51 = vpop.permute.xlu1 %1698  ;;  %v1119_v12 = vpop.permute.xlu0 %1118 }
 0x187   : > { %1788 = vst.msk [vmem:[#allocation2 + $0x38] sm:$0xff] %vm1780_vm9, %v1699_v51  ;;  %v2666_v51 = vld [vmem:[%s3091_s30 + $0x152] sm:$0xff] }
 0x188   : > { %1207 = vst.msk [vmem:[#allocation2 + $0x40] sm:$0xff] %vm1198_vm6, %v1119_v12  ;;  %949 = vrot.lane.b32.xlu1 %v2628_v5, %s3002_s7 }
 0x189   : > { %758 = vrot.lane.b32.xlu0 %v3272_v40, %s3001_s6 }
 0x18a   : > { %v1315_v50 = vpop.permute.xlu1 %1314  ;;  %v1121_v32 = vpop.permute.xlu0 %1120 }
 0x18b   : > { %v1819_v4 = vld [vmem:[#allocation2 + $0x30] sm:$0xff]  ;;  %1403 = vst.msk [vmem:[#allocation2 + $0x40] sm:$0xff] %vm1394_vm7, %v1315_v50 }
 0x18c   : > { %1208 = vst.msk [vmem:[#allocation2 + $0x48] sm:$0xff] %vm1198_vm6, %v1121_v32  ;;  %2771 = vmatprep.mubr.msk.f32.mxu0 %vm1850_vm10, %v1819_v4  ;;  %1720 = vrot.lane.b32.xlu1 %v2660_v33, %s3006_s10  ;;  %v2667_v32 = vld [vmem:[%s3091_s30 + $0x15a] sm:$0xff] }
 0x18d   : > { %1529 = vrot.lane.b32.xlu0 %v2629_v41, %s3005_s21 }
 0x18e   : > { %v1508_v18 = vpop.permute.xlu1 %1507  ;;  %v1317_v40 = vpop.permute.xlu0 %1316  ;;  %v1820_v21 = vld [vmem:[#allocation2 + $0x38] sm:$0xff] }
 0x18f   : > { %1596 = vst.msk [vmem:[#allocation2 + $0x40] sm:$0xff] %vm1587_vm8, %v1508_v18  ;;  %2772 = vmatmul.mubr.msk.f32.gmra.mxu0 %vm1850_vm10, %v1820_v21  ;;  %v2604_v21 = vld [vmem:[%s3091_s30 + $0x168] sm:$0xff] }
 0x190   : > { %1404 = vst.msk [vmem:[#allocation2 + $0x48] sm:$0xff] %vm1394_vm7, %v1317_v40  ;;  %1142 = vrot.lane.b32.xlu1 %v2660_v33, %s3003_s8 }
 0x191   : > { %951 = vrot.lane.b32.xlu0 %v2629_v41, %s3002_s7 }
 0x192   : > { %v1510_v62 = vpop.permute.xlu1 %1509  ;;  %v930_v30 = vpop.permute.xlu0 %929 }
 0x193   : > { %1597 = vst.msk [vmem:[#allocation2 + $0x48] sm:$0xff] %vm1587_vm8, %v1510_v62 }
 0x194   : > { %1016 = vst.msk [vmem:[#allocation2 + $0x50] sm:$0xff] %vm1005_vm5, %v930_v30  ;;  %1144 = vrot.lane.b32.xlu1 %v2661_v16, %s3003_s8 }
 0x195   : > { %1722 = vrot.lane.b32.xlu0 %v2661_v16, %s3006_s10 }
 0x196   : > { %v932_v53 = vpop.permute.xlu1 %931  ;;  %v1701_v63 = vpop.permute.xlu0 %1700 }
 0x197   : > { %1017 = vst.msk [vmem:[#allocation2 + $0x58] sm:$0xff] %vm1005_vm5, %v932_v53  ;;  %v2605_v53 = vld [vmem:[%s3091_s30 + $0x170] sm:$0xff] }
 0x198   : > { %1789 = vst.msk [vmem:[#allocation2 + $0x40] sm:$0xff] %vm1780_vm9, %v1701_v63  ;;  %760 = vrot.lane.b32.xlu1 %v3288_v44, %s3001_s6  ;;  %v2636_v63 = vld [vmem:[%s3091_s30 + $0x169] sm:$0xff] }
 0x199   : > { %1338 = vrot.lane.b32.xlu0 %v3288_v44, %s3004_s9  ;;  %v2631_v44 = vld [vmem:[%s3091_s30 + $0x129] sm:$0xff] }
 0x19a   : > { %v1703_v35 = vpop.permute.xlu1 %1702  ;;  %v1123_v52 = vpop.permute.xlu0 %1122 }
 0x19b   : > { %1790 = vst.msk [vmem:[#allocation2 + $0x48] sm:$0xff] %vm1780_vm9, %v1703_v35 }
 0x19c   : > { %1209 = vst.msk [vmem:[#allocation2 + $0x50] sm:$0xff] %vm1198_vm6, %v1123_v52  ;;  %1531 = vrot.lane.b32.xlu1 %v2630_v23, %s3005_s21 }
 0x19d   : > { %1340 = vrot.lane.b32.xlu0 %v3291_v45, %s3004_s9 }
 0x19e   : > { %v1319_v29 = vpop.permute.xlu1 %1318  ;;  %v1125_v22 = vpop.permute.xlu0 %1124 }
 0x19f   : > { %v1821_v56 = vld [vmem:[#allocation2 + $0x40] sm:$0xff]  ;;  %1405 = vst.msk [vmem:[#allocation2 + $0x50] sm:$0xff] %vm1394_vm7, %v1319_v29  ;;  %v2637_v29 = vld [vmem:[%s3091_s30 + $0x171] sm:$0xff] }
 0x1a0   : > { %1210 = vst.msk [vmem:[#allocation2 + $0x58] sm:$0xff] %vm1198_vm6, %v1125_v22  ;;  %2774 = vmatprep.mubr.msk.f32.mxu0 %vm1850_vm10, %v1821_v56  ;;  %953 = vrot.lane.b32.xlu1 %v2630_v23, %s3002_s7  ;;  %v2668_v22 = vld [vmem:[%s3091_s30 + $0x16a] sm:$0xff] }
 0x1a1   : > { %762 = vrot.lane.b32.xlu0 %v2505_v34, %s3001_s6 }
 0x1a2   : > { %v1512_v45 = vpop.permute.xlu1 %1511  ;;  %v1321_v57 = vpop.permute.xlu0 %1320  ;;  %v1822_v6 = vld [vmem:[#allocation2 + $0x48] sm:$0xff] }
 0x1a3   : > { %1598 = vst.msk [vmem:[#allocation2 + $0x50] sm:$0xff] %vm1587_vm8, %v1512_v45  ;;  %2775 = vmatmul.mubr.msk.f32.gmra.mxu0 %vm1850_vm10, %v1822_v6  ;;  %v2669_v6 = vld [vmem:[%s3091_s30 + $0x172] sm:$0xff] }
 0x1a4   : > { %1406 = vst.msk [vmem:[#allocation2 + $0x58] sm:$0xff] %vm1394_vm7, %v1321_v57  ;;  %1724 = vrot.lane.b32.xlu1 %v2662_v7, %s3006_s10 }
 0x1a5   : > { %1533 = vrot.lane.b32.xlu0 %v2631_v44, %s3005_s21 }
 0x1a6   : > { %v1514_v54 = vpop.permute.xlu1 %1513  ;;  %v934_v0 = vpop.permute.xlu0 %933 }
 0x1a7   : > { %1599 = vst.msk [vmem:[#allocation2 + $0x58] sm:$0xff] %vm1587_vm8, %v1514_v54 }
 0x1a8   : > { %1018 = vst.msk [vmem:[#allocation2 + $0x60] sm:$0xff] %vm1005_vm5, %v934_v0  ;;  %1146 = vrot.lane.b32.xlu1 %v2662_v7, %s3003_s8 }
 0x1a9   : > { %955 = vrot.lane.b32.xlu0 %v2631_v44, %s3002_s7 }
 0x1aa   : > { %v936_v43 = vpop.permute.xlu1 %935  ;;  %v1705_v2 = vpop.permute.xlu0 %1704 }
 0x1ab   : > { %1019 = vst.msk [vmem:[#allocation2 + $0x68] sm:$0xff] %vm1005_vm5, %v936_v43 }
 0x1ac   : > { %1791 = vst.msk [vmem:[#allocation2 + $0x50] sm:$0xff] %vm1780_vm9, %v1705_v2  ;;  %1148 = vrot.lane.b32.xlu1 %v2663_v55, %s3003_s8 }
 0x1ad   : > { %1726 = vrot.lane.b32.xlu0 %v2663_v55, %s3006_s10  ;;  %v2606_v55 = vld [vmem:[%s3091_s30 + $0x180] sm:$0xff] }
 0x1ae   : > { %v1707_v37 = vpop.permute.xlu1 %1706  ;;  %v1127_v42 = vpop.permute.xlu0 %1126 }
 0x1af   : > { %1792 = vst.msk [vmem:[#allocation2 + $0x58] sm:$0xff] %vm1780_vm9, %v1707_v37  ;;  %v2607_v37 = vld [vmem:[%s3091_s30 + $0x188] sm:$0xff] }
 0x1b0   : > { %1211 = vst.msk [vmem:[#allocation2 + $0x60] sm:$0xff] %vm1198_vm6, %v1127_v42  ;;  %764 = vrot.lane.b32.xlu1 %v2600_v25, %s3001_s6  ;;  %v2638_v42 = vld [vmem:[%s3091_s30 + $0x181] sm:$0xff] }
 0x1b1   : > { %1342 = vrot.lane.b32.xlu0 %v2600_v25, %s3004_s9 }
 0x1b2   : > { %v1323_v17 = vpop.permute.xlu1 %1322  ;;  %v1129_v9 = vpop.permute.xlu0 %1128 }
 0x1b3   : > { %v1823_v1 = vld [vmem:[#allocation2 + $0x50] sm:$0xff]  ;;  %1407 = vst.msk [vmem:[#allocation2 + $0x60] sm:$0xff] %vm1394_vm7, %v1323_v17 }
 0x1b4   : > { %1212 = vst.msk [vmem:[#allocation2 + $0x68] sm:$0xff] %vm1198_vm6, %v1129_v9  ;;  %2777 = vmatprep.mubr.msk.f32.mxu0 %vm1850_vm10, %v1823_v1  ;;  %1535 = vrot.lane.b32.xlu1 %v2632_v36, %s3005_s21  ;;  %v2639_v1 = vld [vmem:[%s3091_s30 + $0x189] sm:$0xff] }
 0x1b5   : > { %1344 = vrot.lane.b32.xlu0 %v2601_v24, %s3004_s9 }
 0x1b6   : > { %v1516_v8 = vpop.permute.xlu1 %1515  ;;  %v1325_v20 = vpop.permute.xlu0 %1324  ;;  %v1824_v47 = vld [vmem:[#allocation2 + $0x58] sm:$0xff] }
 0x1b7   : > { %1600 = vst.msk [vmem:[#allocation2 + $0x60] sm:$0xff] %vm1587_vm8, %v1516_v8  ;;  %2778 = vmatmul.mubr.msk.f32.gmra.mxu0 %vm1850_vm10, %v1824_v47  ;;  %v2670_v8 = vld [vmem:[%s3091_s30 + $0x182] sm:$0xff] }
 0x1b8   : > { %1408 = vst.msk [vmem:[#allocation2 + $0x68] sm:$0xff] %vm1394_vm7, %v1325_v20  ;;  %957 = vrot.lane.b32.xlu1 %v2632_v36, %s3002_s7 }
 0x1b9   : > { %766 = vrot.lane.b32.xlu0 %v2601_v24, %s3001_s6 }
 0x1ba   : > { %v1518_v46 = vpop.permute.xlu1 %1517  ;;  %v938_v26 = vpop.permute.xlu0 %937 }
 0x1bb   : > { %1601 = vst.msk [vmem:[#allocation2 + $0x68] sm:$0xff] %vm1587_vm8, %v1518_v46 }
 0x1bc   : > { %1020 = vst.msk [vmem:[#allocation2 + $0x70] sm:$0xff] %vm1005_vm5, %v938_v26  ;;  %1728 = vrot.lane.b32.xlu1 %v2664_v27, %s3006_s10  ;;  %v2671_v26 = vld [vmem:[%s3091_s30 + $0x18a] sm:$0xff] }
 0x1bd   : > { %1537 = vrot.lane.b32.xlu0 %v2633_v13, %s3005_s21 }
 0x1be   : > { %v940_v3 = vpop.permute.xlu1 %939  ;;  %v1709_v39 = vpop.permute.xlu0 %1708 }
 0x1bf   : > { %1021 = vst.msk [vmem:[#allocation2 + $0x78] sm:$0xff] %vm1005_vm5, %v940_v3 }
 0x1c0   : > { %1793 = vst.msk [vmem:[#allocation2 + $0x60] sm:$0xff] %vm1780_vm9, %v1709_v39  ;;  %1150 = vrot.lane.b32.xlu1 %v2664_v27, %s3003_s8 }
 0x1c1   : > { %959 = vrot.lane.b32.xlu0 %v2633_v13, %s3002_s7 }
 0x1c2   : > { %v1711_v58 = vpop.permute.xlu1 %1710 }
 0x1c3   : > { %v1131_v10 = vpop.permute.xlu0 %1130  ;;  %1794 = vst.msk [vmem:[#allocation2 + $0x68] sm:$0xff] %vm1780_vm9, %v1711_v58  ;;  %v2609_v58 = vld [vmem:[%s3091_s30 + $0x1a0] sm:$0xff] }
 0x1c4   : > { %1213 = vst.msk [vmem:[#allocation2 + $0x70] sm:$0xff] %vm1198_vm6, %v1131_v10  ;;  %1152 = vrot.lane.b32.xlu1 %v2665_v11, %s3003_s8 }
 0x1c5   : > { %1730 = vrot.lane.b32.xlu0 %v2665_v11, %s3006_s10  ;;  %v2608_v11 = vld [vmem:[%s3091_s30 + $0x198] sm:$0xff] }
 0x1c6   : > { %v1327_v49 = vpop.permute.xlu1 %1326 }
 0x1c7   : > { %v1133_v59 = vpop.permute.xlu0 %1132  ;;  %v1825_v38 = vld [vmem:[#allocation2 + $0x60] sm:$0xff]  ;;  %1409 = vst.msk [vmem:[#allocation2 + $0x70] sm:$0xff] %vm1394_vm7, %v1327_v49 }
 0x1c8   : > { %1214 = vst.msk [vmem:[#allocation2 + $0x78] sm:$0xff] %vm1198_vm6, %v1133_v59  ;;  %2780 = vmatprep.mubr.msk.f32.mxu0 %vm1850_vm10, %v1825_v38  ;;  %768 = vrot.lane.b32.xlu1 %v2602_v19, %s3001_s6  ;;  %v2640_v59 = vld [vmem:[%s3091_s30 + $0x199] sm:$0xff]  ;;  %v2641_v38 = vld [vmem:[%s3091_s30 + $0x1a1] sm:$0xff] }
 0x1c9   : > { %1346 = vrot.lane.b32.xlu0 %v2602_v19, %s3004_s9 }
 0x1ca   : > { %v1520_v28 = vpop.permute.xlu1 %1519  ;;  %v1826_v15 = vld [vmem:[#allocation2 + $0x68] sm:$0xff] }
 0x1cb   : > { %v1329_v60 = vpop.permute.xlu0 %1328  ;;  %1602 = vst.msk [vmem:[#allocation2 + $0x70] sm:$0xff] %vm1587_vm8, %v1520_v28  ;;  %2781 = vmatmul.mubr.msk.f32.gmra.mxu0 %vm1850_vm10, %v1826_v15 }
 0x1cc   : > { %1410 = vst.msk [vmem:[#allocation2 + $0x78] sm:$0xff] %vm1394_vm7, %v1329_v60  ;;  %1539 = vrot.lane.b32.xlu1 %v2634_v48, %s3005_s21 }
 0x1cd   : > { %1348 = vrot.lane.b32.xlu0 %v2603_v31, %s3004_s9 }
 0x1ce   : > { %v1522_v5 = vpop.permute.xlu1 %1521 }
 0x1cf   : > { %v942_v14 = vpop.permute.xlu0 %941  ;;  %1603 = vst.msk [vmem:[#allocation2 + $0x78] sm:$0xff] %vm1587_vm8, %v1522_v5  ;;  %v2672_v5 = vld [vmem:[%s3091_s30 + $0x19a] sm:$0xff] }
 0x1d0   : > { %1022 = vst.msk [vmem:[#allocation2 + $0x80] sm:$0xff] %vm1005_vm5, %v942_v14  ;;  %961 = vrot.lane.b32.xlu1 %v2634_v48, %s3002_s7  ;;  %v2673_v14 = vld [vmem:[%s3091_s30 + $0x1a2] sm:$0xff] }
 0x1d1   : > { %770 = vrot.lane.b32.xlu0 %v2603_v31, %s3001_s6 }
 0x1d2   : > { %v944_v12 = vpop.permute.xlu1 %943 }
 0x1d3   : > { %v1713_v41 = vpop.permute.xlu0 %1712  ;;  %1023 = vst.msk [vmem:[#allocation2 + $0x88] sm:$0xff] %vm1005_vm5, %v944_v12 }
 0x1d4   : > { %1795 = vst.msk [vmem:[#allocation2 + $0x70] sm:$0xff] %vm1780_vm9, %v1713_v41  ;;  %1732 = vrot.lane.b32.xlu1 %v2666_v51, %s3006_s10 }
 0x1d5   : > { %1541 = vrot.lane.b32.xlu0 %v2635_v61, %s3005_s21 }
 0x1d6   : > { %v1715_v33 = vpop.permute.xlu1 %1714 }
 0x1d7   : > { %v1135_v50 = vpop.permute.xlu0 %1134  ;;  %1796 = vst.msk [vmem:[#allocation2 + $0x78] sm:$0xff] %vm1780_vm9, %v1715_v33 }
 0x1d8   : > { %1215 = vst.msk [vmem:[#allocation2 + $0x80] sm:$0xff] %vm1198_vm6, %v1135_v50  ;;  %1154 = vrot.lane.b32.xlu1 %v2666_v51, %s3003_s8 }
 0x1d9   : > { %963 = vrot.lane.b32.xlu0 %v2635_v61, %s3002_s7 }
 0x1da   : > { %v1331_v18 = vpop.permute.xlu1 %1330 }
 0x1db   : > { %v1137_v4 = vpop.permute.xlu0 %1136  ;;  %v1827_v40 = vld [vmem:[#allocation2 + $0x70] sm:$0xff]  ;;  %1411 = vst.msk [vmem:[#allocation2 + $0x80] sm:$0xff] %vm1394_vm7, %v1331_v18 }
 0x1dc   : > { %1216 = vst.msk [vmem:[#allocation2 + $0x88] sm:$0xff] %vm1198_vm6, %v1137_v4  ;;  %2783 = vmatprep.mubr.msk.f32.mxu0 %vm1850_vm10, %v1827_v40  ;;  %1156 = vrot.lane.b32.xlu1 %v2667_v32, %s3003_s8 }
 0x1dd   : > { %1734 = vrot.lane.b32.xlu0 %v2667_v32, %s3006_s10 }
 0x1de   : > { %v1524_v62 = vpop.permute.xlu1 %1523  ;;  %v1828_v30 = vld [vmem:[#allocation2 + $0x78] sm:$0xff] }
 0x1df   : > { %v1333_v16 = vpop.permute.xlu0 %1332  ;;  %1604 = vst.msk [vmem:[#allocation2 + $0x80] sm:$0xff] %vm1587_vm8, %v1524_v62  ;;  %2784 = vmatmul.mubr.msk.f32.gmra.mxu0 %vm1850_vm10, %v1828_v30 }
 0x1e0   : > { %1412 = vst.msk [vmem:[#allocation2 + $0x88] sm:$0xff] %vm1394_vm7, %v1333_v16  ;;  %772 = vrot.lane.b32.xlu1 %v2604_v21, %s3001_s6 }
 0x1e1   : > { %1350 = vrot.lane.b32.xlu0 %v2604_v21, %s3004_s9 }
 0x1e2   : > { %v946_v35 = vpop.permute.xlu1 %945 }
 0x1e3   : > { %v755_v23 = vpop.permute.xlu0 %754  ;;  %1024 = vst.msk [vmem:[#allocation2 + $0x90] sm:$0xff] %vm1005_vm5, %v946_v35 }
 0x1e4   : > { %832 = vst.msk [vmem:[#allocation2 + $0x98] sm:$0xff] %vm812_vm4, %v755_v23  ;;  %1543 = vrot.lane.b32.xlu1 %v2636_v63, %s3005_s21 }
 0x1e5   : > { %1352 = vrot.lane.b32.xlu0 %v2605_v53, %s3004_s9 }
 0x1e6   : > { %v1717_v34 = vpop.permute.xlu1 %1716 }
 0x1e7   : > { %v1526_v52 = vpop.permute.xlu0 %1525  ;;  %1797 = vst.msk [vmem:[#allocation2 + $0x80] sm:$0xff] %vm1780_vm9, %v1717_v34 }
 0x1e8   : > { %1605 = vst.msk [vmem:[#allocation2 + $0x88] sm:$0xff] %vm1587_vm8, %v1526_v52  ;;  %965 = vrot.lane.b32.xlu1 %v2636_v63, %s3002_s7 }
 0x1e9   : > { %774 = vrot.lane.b32.xlu0 %v2605_v53, %s3001_s6 }
 0x1ea   : > { %v1139_v44 = vpop.permute.xlu1 %1138 }
 0x1eb   : > { %v948_v56 = vpop.permute.xlu0 %947  ;;  %1217 = vst.msk [vmem:[#allocation2 + $0x90] sm:$0xff] %vm1198_vm6, %v1139_v44 }
 0x1ec   : > { %1025 = vst.msk [vmem:[#allocation2 + $0x98] sm:$0xff] %vm1005_vm5, %v948_v56  ;;  %1736 = vrot.lane.b32.xlu1 %v2668_v22, %s3006_s10 }
 0x1ed   : > { %1545 = vrot.lane.b32.xlu0 %v2637_v29, %s3005_s21 }
 0x1ee   : > { %v1141_v45 = vpop.permute.xlu1 %1140  ;;  %v1829_v57 = vld [vmem:[#allocation2 + $0x80] sm:$0xff] }
 0x1ef   : > { %v1719_v7 = vpop.permute.xlu0 %1718  ;;  %1218 = vst.msk [vmem:[#allocation2 + $0x98] sm:$0xff] %vm1198_vm6, %v1141_v45  ;;  %2786 = vmatprep.mubr.msk.f32.mxu1 %vm1850_vm10, %v1829_v57 }
 0x1f0   : > { %1798 = vst.msk [vmem:[#allocation2 + $0x88] sm:$0xff] %vm1780_vm9, %v1719_v7  ;;  %1158 = vrot.lane.b32.xlu1 %v2668_v22, %s3003_s8 }
 0x1f1   : > { %967 = vrot.lane.b32.xlu0 %v2637_v29, %s3002_s7 }
 0x1f2   : > { %v757_v0 = vpop.permute.xlu1 %756 }
 0x1f3   : > { %v1335_v54 = vpop.permute.xlu0 %1334  ;;  %833 = vst.msk [vmem:[#allocation2 + $0xa0] sm:$0xff] %vm812_vm4, %v757_v0 }
 0x1f4   : > { %1413 = vst.msk [vmem:[#allocation2 + $0x90] sm:$0xff] %vm1394_vm7, %v1335_v54  ;;  %1160 = vrot.lane.b32.xlu1 %v2669_v6, %s3003_s8 }
 0x1f5   : > { %1738 = vrot.lane.b32.xlu0 %v2669_v6, %s3006_s10 }
 0x1f6   : > { %v1528_v2 = vpop.permute.xlu1 %1527 }
 0x1f7   : > { %v1337_v43 = vpop.permute.xlu0 %1336  ;;  %v1830_v25 = vld [vmem:[#allocation2 + $0x88] sm:$0xff]  ;;  %1606 = vst.msk [vmem:[#allocation2 + $0x90] sm:$0xff] %vm1587_vm8, %v1528_v2 }
 0x1f8   : > { %1414 = vst.msk [vmem:[#allocation2 + $0x98] sm:$0xff] %vm1394_vm7, %v1337_v43  ;;  %2787 = vmatmul.mubr.msk.f32.vlgmr.msra.gmra.mxu1 %vm1850_vm10, %v1830_v25  ;;  %776 = vrot.lane.b32.xlu1 %v2606_v55, %s3001_s6 }
 0x1f9   : > { %1354 = vrot.lane.b32.xlu0 %v2606_v55, %s3004_s9 }
 0x1fa   : > { %v950_v36 = vpop.permute.xlu1 %949 }
 0x1fb   : > { %v759_v24 = vpop.permute.xlu0 %758  ;;  %1026 = vst.msk [vmem:[#allocation2 + $0xa0] sm:$0xff] %vm1005_vm5, %v950_v36 }
 0x1fc   : > { %834 = vst.msk [vmem:[#allocation2 + $0xa8] sm:$0xff] %vm812_vm4, %v759_v24  ;;  %1547 = vrot.lane.b32.xlu1 %v2638_v42, %s3005_s21 }
 0x1fd   : > { %1356 = vrot.lane.b32.xlu0 %v2607_v37, %s3004_s9 }
 0x1fe   : > { %v1721_v9 = vpop.permute.xlu1 %1720 }
 0x1ff   : > { %v1530_v17 = vpop.permute.xlu0 %1529  ;;  %1799 = vst.msk [vmem:[#allocation2 + $0x90] sm:$0xff] %vm1780_vm9, %v1721_v9 }
 0x200   : > { %1607 = vst.msk [vmem:[#allocation2 + $0x98] sm:$0xff] %vm1587_vm8, %v1530_v17  ;;  %969 = vrot.lane.b32.xlu1 %v2638_v42, %s3002_s7 }
 0x201   : > { %778 = vrot.lane.b32.xlu0 %v2607_v37, %s3001_s6  ;;  %s4002_s6 = sand.u32 1, %s2981_s13  }
 0x202   : > { %v1143_v47 = vpop.permute.xlu1 %1142  ;;  %s2480_s30 = sshll.u32 %s4002_s6, 1  ;;  %s2326_s26 = scalar_lea.sflag [#allocation4], %s4002_s6 }
 0x203   : > { %v952_v20 = vpop.permute.xlu0 %951  ;;  %1219 = vst.msk [vmem:[#allocation2 + $0xa0] sm:$0xff] %vm1198_vm6, %v1143_v47 }
 0x204   : > { %1027 = vst.msk [vmem:[#allocation2 + $0xa8] sm:$0xff] %vm1005_vm5, %v952_v20  ;;  %1740 = vrot.lane.b32.xlu1 %v2670_v8, %s3006_s10 }
 0x205   : > { %1549 = vrot.lane.b32.xlu0 %v2639_v1, %s3005_s21 }
 0x206   : > { %v1145_v27 = vpop.permute.xlu1 %1144  ;;  %v1831_v46 = vld [vmem:[#allocation2 + $0x90] sm:$0xff] }
 0x207   : > { %v1723_v13 = vpop.permute.xlu0 %1722  ;;  %1220 = vst.msk [vmem:[#allocation2 + $0xa8] sm:$0xff] %vm1198_vm6, %v1145_v27  ;;  %2789 = vmatprep.mubr.msk.f32.mxu1 %vm1850_vm10, %v1831_v46 }
 0x208   : > { %1800 = vst.msk [vmem:[#allocation2 + $0x98] sm:$0xff] %vm1780_vm9, %v1723_v13  ;;  %1162 = vrot.lane.b32.xlu1 %v2670_v8, %s3003_s8 }
 0x209   : > { %971 = vrot.lane.b32.xlu0 %v2639_v1, %s3002_s7  ;;  %s2479_s7 = sshll.u32 %s4002_s6, 8 }
 0x20a   : > { %v761_v39 = vpop.permute.xlu1 %760 }
 0x20b   : > { %v1339_v3 = vpop.permute.xlu0 %1338  ;;  %835 = vst.msk [vmem:[#allocation2 + $0xb0] sm:$0xff] %vm812_vm4, %v761_v39 }
 0x20c   : > { %1415 = vst.msk [vmem:[#allocation2 + $0xa0] sm:$0xff] %vm1394_vm7, %v1339_v3  ;;  %1164 = vrot.lane.b32.xlu1 %v2671_v26, %s3003_s8  ;;  %s4018_s8 = scalar_lea.vmem [#allocation3], %s2479_s7 }
 0x20d   : > { %1742 = vrot.lane.b32.xlu0 %v2671_v26, %s3006_s10  ;;  %s2346_s18 = sshll.u32 %s4018_s8, 4  ;;  %s4140_s18 = int_to_ptr.vmem [resolvable:$true] %s2346_s18 }
 0x20e   : > { %v1532_v19 = vpop.permute.xlu1 %1531  ;;  %s2891_s27 = scalar_lea.vmem %s4140_s18, 4096  ;;  %p2898_p1 = scmp.lt.s32.totalorder %s4140_s18, %s2896_s29 }
 0x20f   : > { %v1341_v10 = vpop.permute.xlu0 %1340  ;;  %v1832_v49 = vld [vmem:[#allocation2 + $0x98] sm:$0xff]  ;;  %1608 = vst.msk [vmem:[#allocation2 + $0xa0] sm:$0xff] %vm1587_vm8, %v1532_v19  ;;  %p2892_p12 = scmp.ne.s32.totalorder %s4140_s18, %s2891_s27  ;;  %p2899_p2 = scmp.lt.s32.totalorder %s2897_s4, %s2891_s27 }
 0x210   : > { %1416 = vst.msk [vmem:[#allocation2 + $0xa8] sm:$0xff] %vm1394_vm7, %v1341_v10  ;;  %2790 = vmatmul.mubr.msk.f32.gmra.mxu1 %vm1850_vm10, %v1832_v49  ;;  %1360 = vrot.lane.b32.xlu1 %v2609_v58, %s3004_s9 }
 0x211   : > { %1358 = vrot.lane.b32.xlu0 %v2608_v11, %s3004_s9  ;;  %s4119_s9 = scalar_lea.vmem [#allocation5], %s2480_s30  ;;  %p2893_p13 = pnand %p2892_p12, %p3071_p4 }
 0x212   : > { %v954_v48 = vpop.permute.xlu1 %953  ;;  %p2900_p3 = por %p2899_p2, %p2898_p1 }
 0x213   : > { %v763_v31 = vpop.permute.xlu0 %762  ;;  %1028 = vst.msk [vmem:[#allocation2 + $0xb0] sm:$0xff] %vm1005_vm5, %v954_v48  ;;  %v2764_v28 = vpop.f32.mrf.mxu0  ;;  %p2894_p0 = pneg %p2893_p13 }
 0x214   : > { %836 = vst.msk [vmem:[#allocation2 + $0xb8] sm:$0xff] %vm812_vm4, %v763_v31  ;;  %2177 = vst [vmem:[%s4018_s8 + $0x8] sm:$0xff] %v2764_v28  ;;  %v2255_v60 = vmul.f32 %v2764_v28, %v2764_v28  ;;  %1553 = vrot.lane.b32.xlu1 %v2641_v38, %s3005_s21 }
 0x215   : > { %1551 = vrot.lane.b32.xlu0 %v2640_v59, %s3005_s21  ;;  %v2017_v15 = vpop.f32.mrf.mxu0  ;;  %p2901_p5 = pnand %p2900_p3, %p2894_p0 }
 0x216   : > { %2176 = vst [vmem:[%s4018_s8] sm:$0xff] %v2017_v15  ;;  %v2214_v61 = vadd.f32 %v2764_v28, %v2017_v15  ;;  %v2254_v51 = vmul.f32 %v2017_v15, %v2017_v15  ;;  %v1725_v41 = vpop.permute.xlu1 %1724 }
 0x217   : > { %v1534_v12 = vpop.permute.xlu0 %1533  ;;  %1801 = vst.msk [vmem:[#allocation2 + $0xa0] sm:$0xff] %vm1780_vm9, %v1725_v41 }
 0x218   : > { %1609 = vst.msk [vmem:[#allocation2 + $0xa8] sm:$0xff] %vm1587_vm8, %v1534_v12  ;;  %v2286_v33 = vadd.f32 %v2255_v60, %v2254_v51  ;;  %1746 = vrot.lane.b32.xlu1 %v2673_v14, %s3006_s10 }
 0x219   : > { %1744 = vrot.lane.b32.xlu0 %v2672_v5, %s3006_s10 }
 0x21a   : > { %v1147_v32 = vpop.permute.xlu1 %1146 }
 0x21b   : > { %v956_v50 = vpop.permute.xlu0 %955  ;;  %1221 = vst.msk [vmem:[#allocation2 + $0xb0] sm:$0xff] %vm1198_vm6, %v1147_v32 }
 0x21c   : > { %1029 = vst.msk [vmem:[#allocation2 + $0xb8] sm:$0xff] %vm1005_vm5, %v956_v50 }
 0x21e   : > { %v1149_v18 = vpop.permute.xlu1 %1148  ;;  %v1833_v40 = vld [vmem:[#allocation2 + $0xa0] sm:$0xff] }
 0x21f   : > { %v1727_v4 = vpop.permute.xlu0 %1726  ;;  %1222 = vst.msk [vmem:[#allocation2 + $0xb8] sm:$0xff] %vm1198_vm6, %v1149_v18  ;;  %2792 = vmatprep.mubr.msk.f32.mxu1 %vm1850_vm10, %v1833_v40 }
 0x220   : > { %1802 = vst.msk [vmem:[#allocation2 + $0xa8] sm:$0xff] %vm1780_vm9, %v1727_v4 }
 0x222   : > { %v765_v16 = vpop.permute.xlu1 %764 }
 0x223   : > { %v1343_v21 = vpop.permute.xlu0 %1342  ;;  %837 = vst.msk [vmem:[#allocation2 + $0xc0] sm:$0xff] %vm812_vm4, %v765_v16 }
 0x224   : > { %1417 = vst.msk [vmem:[#allocation2 + $0xb0] sm:$0xff] %vm1394_vm7, %v1343_v21 }
 0x226   : > { %v1536_v30 = vpop.permute.xlu1 %1535 }
 0x227   : > { %v1345_v62 = vpop.permute.xlu0 %1344  ;;  %v1834_v53 = vld [vmem:[#allocation2 + $0xa8] sm:$0xff]  ;;  %1610 = vst.msk [vmem:[#allocation2 + $0xb0] sm:$0xff] %vm1587_vm8, %v1536_v30  ;;  %v2767_v63 = vpop.f32.mrf.mxu0 }
 0x228   : > { %1418 = vst.msk [vmem:[#allocation2 + $0xb8] sm:$0xff] %vm1394_vm7, %v1345_v62  ;;  %2793 = vmatmul.mubr.msk.f32.gmra.mxu1 %vm1850_vm10, %v1834_v53  ;;  %2179 = vst [vmem:[%s4018_s8 + $0x18] sm:$0xff] %v2767_v63  ;;  %v2257_v22 = vmul.f32 %v2767_v63, %v2767_v63 }
 0x229   : > { %v2027_v23 = vpop.f32.mrf.mxu0 }
 0x22a   : > { %2178 = vst [vmem:[%s4018_s8 + $0x10] sm:$0xff] %v2027_v23  ;;  %v2215_v35 = vadd.f32 %v2214_v61, %v2027_v23  ;;  %v2256_v52 = vmul.f32 %v2027_v23, %v2027_v23  ;;  %v958_v29 = vpop.permute.xlu1 %957 }
 0x22b   : > { %v767_v34 = vpop.permute.xlu0 %766  ;;  %1030 = vst.msk [vmem:[#allocation2 + $0xc0] sm:$0xff] %vm1005_vm5, %v958_v29 }
 0x22c   : > { %838 = vst.msk [vmem:[#allocation2 + $0xc8] sm:$0xff] %vm812_vm4, %v767_v34  ;;  %v2287_v56 = vadd.f32 %v2286_v33, %v2256_v52  ;;  %v2216_v44 = vadd.f32 %v2767_v63, %v2215_v35 }
 0x22e   : > { %v1729_v45 = vpop.permute.xlu1 %1728  ;;  %v2288_v57 = vadd.f32 %v2287_v56, %v2257_v22 }
 0x22f   : > { %v1538_v7 = vpop.permute.xlu0 %1537  ;;  %1803 = vst.msk [vmem:[#allocation2 + $0xb0] sm:$0xff] %vm1780_vm9, %v1729_v45 }
 0x230   : > { %1611 = vst.msk [vmem:[#allocation2 + $0xb8] sm:$0xff] %vm1587_vm8, %v1538_v7 }
 0x232   : > { %v1151_v54 = vpop.permute.xlu1 %1150 }
 0x233   : > { %v960_v6 = vpop.permute.xlu0 %959  ;;  %1223 = vst.msk [vmem:[#allocation2 + $0xc0] sm:$0xff] %vm1198_vm6, %v1151_v54 }
 0x234   : > { %1031 = vst.msk [vmem:[#allocation2 + $0xc8] sm:$0xff] %vm1005_vm5, %v960_v6 }
 0x236   : > { %v1153_v55 = vpop.permute.xlu1 %1152  ;;  %v1835_v43 = vld [vmem:[#allocation2 + $0xb0] sm:$0xff] }
 0x237   : > { %v1731_v0 = vpop.permute.xlu0 %1730  ;;  %1224 = vst.msk [vmem:[#allocation2 + $0xc8] sm:$0xff] %vm1198_vm6, %v1153_v55  ;;  %2795 = vmatprep.mubr.msk.f32.mxu1 %vm1850_vm10, %v1835_v43 }
 0x238   : > { %1804 = vst.msk [vmem:[#allocation2 + $0xb8] sm:$0xff] %vm1780_vm9, %v1731_v0 }
 0x23a   : > { %v769_v25 = vpop.permute.xlu1 %768 }
 0x23b   : > { %v1347_v2 = vpop.permute.xlu0 %1346  ;;  %839 = vst.msk [vmem:[#allocation2 + $0xd0] sm:$0xff] %vm812_vm4, %v769_v25  ;;  %v2770_v37 = vpop.f32.mrf.mxu0 }
 0x23c   : > { %1419 = vst.msk [vmem:[#allocation2 + $0xc0] sm:$0xff] %vm1394_vm7, %v1347_v2  ;;  %2181 = vst [vmem:[%s4018_s8 + $0x28] sm:$0xff] %v2770_v37  ;;  %v2259_v8 = vmul.f32 %v2770_v37, %v2770_v37 }
 0x23d   : > { %v2037_v42 = vpop.f32.mrf.mxu0 }
 0x23e   : > { %2180 = vst [vmem:[%s4018_s8 + $0x20] sm:$0xff] %v2037_v42  ;;  %v2217_v24 = vadd.f32 %v2216_v44, %v2037_v42  ;;  %v2258_v36 = vmul.f32 %v2037_v42, %v2037_v42  ;;  %v1540_v9 = vpop.permute.xlu1 %1539 }
 0x23f   : > { %v1349_v17 = vpop.permute.xlu0 %1348  ;;  %v1836_v1 = vld [vmem:[#allocation2 + $0xb8] sm:$0xff]  ;;  %1612 = vst.msk [vmem:[#allocation2 + $0xc0] sm:$0xff] %vm1587_vm8, %v1540_v9 }
 0x240   : > { %1420 = vst.msk [vmem:[#allocation2 + $0xc8] sm:$0xff] %vm1394_vm7, %v1349_v17  ;;  %2796 = vmatmul.mubr.msk.f32.gmra.mxu1 %vm1850_vm10, %v1836_v1  ;;  %v2289_v20 = vadd.f32 %v2288_v57, %v2258_v36  ;;  %v2218_v47 = vadd.f32 %v2770_v37, %v2217_v24 }
 0x242   : > { %v962_v27 = vpop.permute.xlu1 %961  ;;  %v2290_v46 = vadd.f32 %v2289_v20, %v2259_v8 }
 0x243   : > { %v771_v13 = vpop.permute.xlu0 %770  ;;  %1032 = vst.msk [vmem:[#allocation2 + $0xd0] sm:$0xff] %vm1005_vm5, %v962_v27 }
 0x244   : > { %840 = vst.msk [vmem:[#allocation2 + $0xd8] sm:$0xff] %vm812_vm4, %v771_v13 }
 0x246   : > { %v1733_v3 = vpop.permute.xlu1 %1732 }
 0x247   : > { %v1542_v26 = vpop.permute.xlu0 %1541  ;;  %1805 = vst.msk [vmem:[#allocation2 + $0xc0] sm:$0xff] %vm1780_vm9, %v1733_v3 }
 0x248   : > { %1613 = vst.msk [vmem:[#allocation2 + $0xc8] sm:$0xff] %vm1587_vm8, %v1542_v26 }
 0x24a   : > { %v1155_v11 = vpop.permute.xlu1 %1154 }
 0x24b   : > { %v964_v39 = vpop.permute.xlu0 %963  ;;  %1225 = vst.msk [vmem:[#allocation2 + $0xd0] sm:$0xff] %vm1198_vm6, %v1155_v11 }
 0x24c   : > { %1033 = vst.msk [vmem:[#allocation2 + $0xd8] sm:$0xff] %vm1005_vm5, %v964_v39 }
 0x24e   : > { %v1157_v10 = vpop.permute.xlu1 %1156  ;;  %v1837_v19 = vld [vmem:[#allocation2 + $0xc0] sm:$0xff] }
 0x24f   : > { %v1735_v58 = vpop.permute.xlu0 %1734  ;;  %1226 = vst.msk [vmem:[#allocation2 + $0xd8] sm:$0xff] %vm1198_vm6, %v1157_v10  ;;  %v2773_v49 = vpop.f32.mrf.mxu0  ;;  %2798 = vmatprep.mubr.msk.f32.mxu1 %vm1850_vm10, %v1837_v19 }
 0x250   : > { %1806 = vst.msk [vmem:[#allocation2 + $0xc8] sm:$0xff] %vm1780_vm9, %v1735_v58  ;;  %2183 = vst [vmem:[%s4018_s8 + $0x38] sm:$0xff] %v2773_v49  ;;  %v2261_v60 = vmul.f32 %v2773_v49, %v2773_v49 }
 0x251   : > { %v2047_v59 = vpop.f32.mrf.mxu0 }
 0x252   : > { %2182 = vst [vmem:[%s4018_s8 + $0x30] sm:$0xff] %v2047_v59  ;;  %v2219_v38 = vadd.f32 %v2218_v47, %v2047_v59  ;;  %v2260_v31 = vmul.f32 %v2047_v59, %v2047_v59  ;;  %v773_v28 = vpop.permute.xlu1 %772 }
 0x253   : > { %v1351_v48 = vpop.permute.xlu0 %1350  ;;  %841 = vst.msk [vmem:[#allocation2 + $0xe0] sm:$0xff] %vm812_vm4, %v773_v28 }
 0x254   : > { %1421 = vst.msk [vmem:[#allocation2 + $0xd0] sm:$0xff] %vm1394_vm7, %v1351_v48  ;;  %v2291_v15 = vadd.f32 %v2290_v46, %v2260_v31  ;;  %v2220_v5 = vadd.f32 %v2773_v49, %v2219_v38 }
 0x256   : > { %v1544_v61 = vpop.permute.xlu1 %1543  ;;  %v2292_v12 = vadd.f32 %v2291_v15, %v2261_v60 }
 0x257   : > { %v1353_v14 = vpop.permute.xlu0 %1352  ;;  %v1838_v51 = vld [vmem:[#allocation2 + $0xc8] sm:$0xff]  ;;  %1614 = vst.msk [vmem:[#allocation2 + $0xd0] sm:$0xff] %vm1587_vm8, %v1544_v61 }
 0x258   : > { %1422 = vst.msk [vmem:[#allocation2 + $0xd8] sm:$0xff] %vm1394_vm7, %v1353_v14  ;;  %2799 = vmatmul.mubr.msk.f32.gmra.mxu1 %vm1850_vm10, %v1838_v51 }
 0x25a   : > { %v966_v33 = vpop.permute.xlu1 %965 }
 0x25b   : > { %v775_v41 = vpop.permute.xlu0 %774  ;;  %1034 = vst.msk [vmem:[#allocation2 + $0xe0] sm:$0xff] %vm1005_vm5, %v966_v33 }
 0x25c   : > { %842 = vst.msk [vmem:[#allocation2 + $0xe8] sm:$0xff] %vm812_vm4, %v775_v41 }
 0x25e   : > { %v1737_v32 = vpop.permute.xlu1 %1736 }
 0x25f   : > { %v1546_v50 = vpop.permute.xlu0 %1545  ;;  %1807 = vst.msk [vmem:[#allocation2 + $0xd0] sm:$0xff] %vm1780_vm9, %v1737_v32 }
 0x260   : > { %1615 = vst.msk [vmem:[#allocation2 + $0xd8] sm:$0xff] %vm1587_vm8, %v1546_v50 }
 0x262   : > { %v1159_v18 = vpop.permute.xlu1 %1158 }
 0x263   : > { %v968_v4 = vpop.permute.xlu0 %967  ;;  %1227 = vst.msk [vmem:[#allocation2 + $0xe0] sm:$0xff] %vm1198_vm6, %v1159_v18  ;;  %v2776_v40 = vpop.f32.mrf.mxu0 }
 0x264   : > { %1035 = vst.msk [vmem:[#allocation2 + $0xe8] sm:$0xff] %vm1005_vm5, %v968_v4  ;;  %2185 = vst [vmem:[%s4018_s8 + $0x48] sm:$0xff] %v2776_v40  ;;  %v2263_v23 = vmul.f32 %v2776_v40, %v2776_v40 }
 0x265   : > { %v2057_v21 = vpop.f32.mrf.mxu0 }
 0x266   : > { %2184 = vst [vmem:[%s4018_s8 + $0x40] sm:$0xff] %v2057_v21  ;;  %v2221_v16 = vadd.f32 %v2220_v5, %v2057_v21  ;;  %v2262_v62 = vmul.f32 %v2057_v21, %v2057_v21  ;;  %v1161_v53 = vpop.permute.xlu1 %1160  ;;  %v1839_v63 = vld [vmem:[#allocation2 + $0xd0] sm:$0xff] }
 0x267   : > { %v1739_v30 = vpop.permute.xlu0 %1738  ;;  %1228 = vst.msk [vmem:[#allocation2 + $0xe8] sm:$0xff] %vm1198_vm6, %v1161_v53  ;;  %2801 = vmatprep.mubr.msk.f32.mxu1 %vm1850_vm10, %v1839_v63 }
 0x268   : > { %1808 = vst.msk [vmem:[#allocation2 + $0xd8] sm:$0xff] %vm1780_vm9, %v1739_v30  ;;  %v2293_v35 = vadd.f32 %v2292_v12, %v2262_v62  ;;  %v2222_v52 = vadd.f32 %v2776_v40, %v2221_v16 }
 0x26a   : > { %v777_v29 = vpop.permute.xlu1 %776  ;;  %v2294_v22 = vadd.f32 %v2293_v35, %v2263_v23 }
 0x26b   : > { %v1355_v34 = vpop.permute.xlu0 %1354  ;;  %843 = vst.msk [vmem:[#allocation2 + $0xf0] sm:$0xff] %vm812_vm4, %v777_v29 }
 0x26c   : > { %1423 = vst.msk [vmem:[#allocation2 + $0xe0] sm:$0xff] %vm1394_vm7, %v1355_v34  ;;  %v3007_v34 = vmov 0.0  }
 0x26d   : > { %2212 = vst [vmem:[%s4119_s9] sm:$0x3] %v3007_v34 }
 0x26e   : > { %v1548_v44 = vpop.permute.xlu1 %1547 }
 0x26f   : > { %v1357_v56 = vpop.permute.xlu0 %1356  ;;  %v1840_v7 = vld [vmem:[#allocation2 + $0xd8] sm:$0xff]  ;;  %1616 = vst.msk [vmem:[#allocation2 + $0xe0] sm:$0xff] %vm1587_vm8, %v1548_v44 }
 0x270   : > { %1424 = vst.msk [vmem:[#allocation2 + $0xe8] sm:$0xff] %vm1394_vm7, %v1357_v56  ;;  %2802 = vmatmul.mubr.msk.f32.gmra.mxu1 %vm1850_vm10, %v1840_v7 }
 0x272   : > { %v970_v57 = vpop.permute.xlu1 %969 }
 0x273   : > { %v779_v45 = vpop.permute.xlu0 %778  ;;  %1036 = vst.msk [vmem:[#allocation2 + $0xf0] sm:$0xff] %vm1005_vm5, %v970_v57 }
 0x274   : > { %844 = vst.msk [vmem:[#allocation2 + $0xf8] sm:$0xff] %vm812_vm4, %v779_v45 }
 0x276   : > { %v1741_v54 = vpop.permute.xlu1 %1740 }
 0x277   : > { %v1550_v6 = vpop.permute.xlu0 %1549  ;;  %1809 = vst.msk [vmem:[#allocation2 + $0xe0] sm:$0xff] %vm1780_vm9, %v1741_v54  ;;  %v2779_v0 = vpop.f32.mrf.mxu0 }
 0x278   : > { %1617 = vst.msk [vmem:[#allocation2 + $0xe8] sm:$0xff] %vm1587_vm8, %v1550_v6  ;;  %2187 = vst [vmem:[%s4018_s8 + $0x58] sm:$0xff] %v2779_v0  ;;  %v2265_v42 = vmul.f32 %v2779_v0, %v2779_v0 }
 0x279   : > { %v2067_v55 = vpop.f32.mrf.mxu0 }
 0x27a   : > { %2186 = vst [vmem:[%s4018_s8 + $0x50] sm:$0xff] %v2067_v55  ;;  %v2223_v43 = vadd.f32 %v2222_v52, %v2067_v55  ;;  %v2264_v2 = vmul.f32 %v2067_v55, %v2067_v55  ;;  %v1163_v37 = vpop.permute.xlu1 %1162 }
 0x27b   : > { %v972_v25 = vpop.permute.xlu0 %971  ;;  %1229 = vst.msk [vmem:[#allocation2 + $0xf0] sm:$0xff] %vm1198_vm6, %v1163_v37 }
 0x27c   : > { %1037 = vst.msk [vmem:[#allocation2 + $0xf8] sm:$0xff] %vm1005_vm5, %v972_v25  ;;  %v2295_v24 = vadd.f32 %v2294_v22, %v2264_v2  ;;  %v2224_v36 = vadd.f32 %v2779_v0, %v2223_v43 }
 0x27e   : > { %v1165_v9 = vpop.permute.xlu1 %1164  ;;  %v1841_v1 = vld [vmem:[#allocation2 + $0xe0] sm:$0xff]  ;;  %v2296_v8 = vadd.f32 %v2295_v24, %v2265_v42 }
 0x27f   : > { %v1743_v17 = vpop.permute.xlu0 %1742  ;;  %1230 = vst.msk [vmem:[#allocation2 + $0xf8] sm:$0xff] %vm1198_vm6, %v1165_v9  ;;  %2804 = vmatprep.mubr.msk.f32.mxu1 %vm1850_vm10, %v1841_v1 }
 0x280   : > { %1810 = vst.msk [vmem:[#allocation2 + $0xe8] sm:$0xff] %vm1780_vm9, %v1743_v17 }
 0x282   : > { %v1361_v47 = vpop.permute.xlu1 %1360 }
 0x283   : > { %v1359_v20 = vpop.permute.xlu0 %1358  ;;  %1426 = vst.msk [vmem:[#allocation2 + $0xf8] sm:$0xff] %vm1394_vm7, %v1361_v47 }
 0x284   : > { %1425 = vst.msk [vmem:[#allocation2 + $0xf0] sm:$0xff] %vm1394_vm7, %v1359_v20 }
 0x286   : > { %v1554_v27 = vpop.permute.xlu1 %1553 }
 0x287   : > { %v1552_v13 = vpop.permute.xlu0 %1551  ;;  %v1842_v46 = vld [vmem:[#allocation2 + $0xe8] sm:$0xff]  ;;  %1619 = vst.msk [vmem:[#allocation2 + $0xf8] sm:$0xff] %vm1587_vm8, %v1554_v27 }
 0x288   : > { %1618 = vst.msk [vmem:[#allocation2 + $0xf0] sm:$0xff] %vm1587_vm8, %v1552_v13  ;;  %2805 = vmatmul.mubr.msk.f32.gmra.mxu1 %vm1850_vm10, %v1842_v46 }
 0x28a   : > { %v1747_v3 = vpop.permute.xlu1 %1746 }
 0x28b   : > { %v1745_v26 = vpop.permute.xlu0 %1744  ;;  %1812 = vst.msk [vmem:[#allocation2 + $0xf8] sm:$0xff] %vm1780_vm9, %v1747_v3  ;;  %v2782_v39 = vpop.f32.mrf.mxu0 }
 0x28c   : > { %1811 = vst.msk [vmem:[#allocation2 + $0xf0] sm:$0xff] %vm1780_vm9, %v1745_v26  ;;  %2189 = vst [vmem:[%s4018_s8 + $0x68] sm:$0xff] %v2782_v39  ;;  %v2267_v19 = vmul.f32 %v2782_v39, %v2782_v39 }
 0x28d   : > { %v2077_v11 = vpop.f32.mrf.mxu0 }
 0x28e   : > { %2188 = vst [vmem:[%s4018_s8 + $0x60] sm:$0xff] %v2077_v11  ;;  %v2225_v58 = vadd.f32 %v2224_v36, %v2077_v11  ;;  %v2266_v10 = vmul.f32 %v2077_v11, %v2077_v11 }
 0x290   : > { %v2297_v49 = vadd.f32 %v2296_v8, %v2266_v10  ;;  %v2226_v59 = vadd.f32 %v2782_v39, %v2225_v58 }
 0x292   : > { %v1844_v31 = vld [vmem:[#allocation2 + $0xf8] sm:$0xff]  ;;  %v2298_v48 = vadd.f32 %v2297_v49, %v2267_v19 }
 0x293   : > { %v1843_v38 = vld [vmem:[#allocation2 + $0xf0] sm:$0xff] }
 0x294   : > { %2807 = vmatprep.mubr.msk.f32.mxu1 %vm1850_vm10, %v1843_v38 }
 0x295   : > { %2808 = vmatmul.mubr.msk.f32.gmra.mxu1 %vm1850_vm10, %v1844_v31 }
 0x29f   : > { %v2785_v28 = vpop.f32.mrf.mxu0 }
 0x2a0   : > { %2191 = vst [vmem:[%s4018_s8 + $0x78] sm:$0xff] %v2785_v28  ;;  %v2269_v14 = vmul.f32 %v2785_v28, %v2785_v28 }
 0x2a1   : > { %v2087_v60 = vpop.f32.mrf.mxu0 }
 0x2a2   : > { %2190 = vst [vmem:[%s4018_s8 + $0x70] sm:$0xff] %v2087_v60  ;;  %v2227_v15 = vadd.f32 %v2226_v59, %v2087_v60  ;;  %v2268_v5 = vmul.f32 %v2087_v60, %v2087_v60 }
 0x2a4   : > { %v2228_v61 = vadd.f32 %v2785_v28, %v2227_v15  ;;  %v2299_v51 = vadd.f32 %v2298_v48, %v2268_v5 }
 0x2a6   : > { %v2300_v12 = vadd.f32 %v2299_v51, %v2269_v14 }
 0x2b8   : > { %v2788_v41 = vpop.f32.mrf.mxu1 }
 0x2b9   : > { %2193 = vst [vmem:[%s4018_s8 + $0x88] sm:$0xff] %v2788_v41  ;;  %v2271_v4 = vmul.f32 %v2788_v41, %v2788_v41 }
 0x2ba   : > { %v2097_v33 = vpop.f32.mrf.mxu1 }
 0x2bb   : > { %2192 = vst [vmem:[%s4018_s8 + $0x80] sm:$0xff] %v2097_v33  ;;  %v2229_v50 = vadd.f32 %v2228_v61, %v2097_v33  ;;  %v2270_v32 = vmul.f32 %v2097_v33, %v2097_v33 }
 0x2bd   : > { %v2301_v18 = vadd.f32 %v2300_v12, %v2270_v32  ;;  %v2230_v40 = vadd.f32 %v2788_v41, %v2229_v50 }
 0x2bf   : > { %v2302_v21 = vadd.f32 %v2301_v18, %v2271_v4 }
 0x2d0   : > { %v2791_v16 = vpop.f32.mrf.mxu1 }
 0x2d1   : > { %2195 = vst [vmem:[%s4018_s8 + $0x98] sm:$0xff] %v2791_v16  ;;  %v2273_v63 = vmul.f32 %v2791_v16, %v2791_v16 }
 0x2d2   : > { %v2107_v62 = vpop.f32.mrf.mxu1 }
 0x2d3   : > { %2194 = vst [vmem:[%s4018_s8 + $0x90] sm:$0xff] %v2107_v62  ;;  %v2231_v30 = vadd.f32 %v2230_v40, %v2107_v62  ;;  %v2272_v53 = vmul.f32 %v2107_v62, %v2107_v62 }
 0x2d5   : > { %v2303_v23 = vadd.f32 %v2302_v21, %v2272_v53  ;;  %v2232_v35 = vadd.f32 %v2791_v16, %v2231_v30 }
 0x2d7   : > { %v2304_v52 = vadd.f32 %v2303_v23, %v2273_v63 }
 0x2e8   : > { %v2794_v29 = vpop.f32.mrf.mxu1 }
 0x2e9   : > { %2197 = vst [vmem:[%s4018_s8 + $0xa8] sm:$0xff] %v2794_v29  ;;  %v2275_v7 = vmul.f32 %v2794_v29, %v2794_v29 }
 0x2ea   : > { %v2117_v22 = vpop.f32.mrf.mxu1 }
 0x2eb   : > { %2196 = vst [vmem:[%s4018_s8 + $0xa0] sm:$0xff] %v2117_v22  ;;  %v2233_v56 = vadd.f32 %v2232_v35, %v2117_v22  ;;  %v2274_v44 = vmul.f32 %v2117_v22, %v2117_v22 }
 0x2ed   : > { %v2305_v45 = vadd.f32 %v2304_v52, %v2274_v44  ;;  %v2234_v57 = vadd.f32 %v2794_v29, %v2233_v56 }
 0x2ef   : > { %v2306_v6 = vadd.f32 %v2305_v45, %v2275_v7 }
 0x300   : > { %v2797_v54 = vpop.f32.mrf.mxu1 }
 0x301   : > { %2199 = vst [vmem:[%s4018_s8 + $0xb8] sm:$0xff] %v2797_v54  ;;  %v2277_v2 = vmul.f32 %v2797_v54, %v2797_v54 }
 0x302   : > { %v2127_v0 = vpop.f32.mrf.mxu1 }
 0x303   : > { %2198 = vst [vmem:[%s4018_s8 + $0xb0] sm:$0xff] %v2127_v0  ;;  %v2235_v55 = vadd.f32 %v2234_v57, %v2127_v0  ;;  %v2276_v43 = vmul.f32 %v2127_v0, %v2127_v0 }
 0x305   : > { %v2307_v25 = vadd.f32 %v2306_v6, %v2276_v43  ;;  %v2236_v37 = vadd.f32 %v2797_v54, %v2235_v55 }
 0x307   : > { %v2308_v42 = vadd.f32 %v2307_v25, %v2277_v2 }
 0x318   : > { %v2800_v24 = vpop.f32.mrf.mxu1 }
 0x319   : > { %2201 = vst [vmem:[%s4018_s8 + $0xc8] sm:$0xff] %v2800_v24  ;;  %v2279_v13 = vmul.f32 %v2800_v24, %v2800_v24 }
 0x31a   : > { %v2137_v36 = vpop.f32.mrf.mxu1 }
 0x31b   : > { %2200 = vst [vmem:[%s4018_s8 + $0xc0] sm:$0xff] %v2137_v36  ;;  %v2278_v1 = vmul.f32 %v2137_v36, %v2137_v36  ;;  %v2237_v8 = vadd.f32 %v2236_v37, %v2137_v36 }
 0x31d   : > { %v2309_v20 = vadd.f32 %v2308_v42, %v2278_v1  ;;  %v2238_v27 = vadd.f32 %v2800_v24, %v2237_v8 }
 0x31f   : > { %v2310_v39 = vadd.f32 %v2309_v20, %v2279_v13 }
 0x330   : > { %v2803_v17 = vpop.f32.mrf.mxu1 }
 0x331   : > { %2203 = vst [vmem:[%s4018_s8 + $0xd8] sm:$0xff] %v2803_v17  ;;  %v2281_v58 = vmul.f32 %v2803_v17, %v2803_v17 }
 0x332   : > { %v2147_v9 = vpop.f32.mrf.mxu1 }
 0x333   : > { %2202 = vst [vmem:[%s4018_s8 + $0xd0] sm:$0xff] %v2147_v9  ;;  %v2280_v46 = vmul.f32 %v2147_v9, %v2147_v9  ;;  %v2239_v3 = vadd.f32 %v2238_v27, %v2147_v9 }
 0x335   : > { %v2311_v11 = vadd.f32 %v2310_v39, %v2280_v46  ;;  %v2240_v10 = vadd.f32 %v2803_v17, %v2239_v3 }
 0x337   : > { %v2312_v59 = vadd.f32 %v2311_v11, %v2281_v58 }
 0x348   : > { %v2806_v47 = vpop.f32.mrf.mxu1 }
 0x349   : > { %2205 = vst [vmem:[%s4018_s8 + $0xe8] sm:$0xff] %v2806_v47  ;;  %v2283_v48 = vmul.f32 %v2806_v47, %v2806_v47 }
 0x34a   : > { %v2157_v26 = vpop.f32.mrf.mxu1 }
 0x34b   : > { %2204 = vst [vmem:[%s4018_s8 + $0xe0] sm:$0xff] %v2157_v26  ;;  %v2282_v19 = vmul.f32 %v2157_v26, %v2157_v26  ;;  %v2241_v49 = vadd.f32 %v2240_v10, %v2157_v26 }
 0x34d   : > { %v2313_v38 = vadd.f32 %v2312_v59, %v2282_v19  ;;  %v2242_v28 = vadd.f32 %v2806_v47, %v2241_v49 }
 0x34f   : > { %v2314_v14 = vadd.f32 %v2313_v38, %v2283_v48 }
 0x355   : > { %v2809_v31 = vpop.f32.mrf.mxu1 }
 0x356   : > { %2207 = vst [vmem:[%s4018_s8 + $0xf8] sm:$0xff] %v2809_v31 }
 0x357   : > { %v2167_v60 = vpop.f32.mrf.mxu1 }
 0x358   : > { %2206 = vst [vmem:[%s4018_s8 + $0xf0] sm:$0xff] %v2167_v60  ;;  %v2243_v15 = vadd.f32 %v2242_v28, %v2167_v60  ;;  %v2284_v5 = vmul.f32 %v2167_v60, %v2167_v60 }
 0x359   : > { %2904 = shalt.err (!%p2901_p5)
}
 0x35a   : > { %s2905_s10 = scalar_lea.hbm %s4137_s23, 4096  ;;  %s2909_s30 = scalar_lea.hbm %s4213_s2, 8192 }
 0x35b   : > { %p2906_p6 = scmp.ne.s32.totalorder %s4137_s23, %s2905_s10  ;;  %p2910_p10 = scmp.lt.s32.totalorder %s4137_s23, %s4213_s2 }
 0x35c   : > { %p2911_p11 = scmp.lt.s32.totalorder %s2909_s30, %s2905_s10 }
 0x35d   : > { %p2907_p7 = pnand %p2906_p6, %p3071_p4 }
 0x35e   : > { %p2912_p12 = por %p2911_p11, %p2910_p10 }
 0x35f   : > { %p2908_p9 = pneg %p2907_p7 }
 0x361   : > { %p2913_p13 = pnand %p2912_p12, %p2908_p9 }
 0x363   : > { %2916 = shalt.err (!%p2913_p13)
}
 0x364   : > { %s3009_s21 = smov 128   ;;  %v2285_v61 = vmul.f32 %v2809_v31, %v2809_v31  ;;  %v2244_v51 = vadd.f32 %v2809_v31, %v2243_v15  ;;  %v2315_v12 = vadd.f32 %v2314_v14, %v2284_v5  ;;  %v2213_v30 = vld [vmem:[%s4119_s9] sm:$0x1]  ;;  %v2253_v23 = vld [vmem:[%s4119_s9 + $0x1] sm:$0x1]  ;;  %s2331_s28 = scalar_lea.sflag [#allocation6], %s4002_s6 }
 0x365   : > { %2821 = dma.vmem_to_hbm [thread:$0]  (%p3071_p4), %s4140_s18, 4096, %s4137_s23, %s2326_s26, %s3009_s21, %s3009_s21, %s3000_s5  }
 0x366   : > { %v2245_v41 = vrot.slane %v2244_v51, 4  ;;  %v2316_v33 = vadd.f32 %v2315_v12, %v2285_v61  ;;  %s2711_s5 = sshll.u32 %s2989_s15, 5  ;;  %s2362_s18 = sshll.u32 %s4119_s9, 4  ;;  %s2363_s18 = int_to_ptr.vmem [resolvable:$true] %s2362_s18 }
 0x367   : > { %s2360_s27 = scalar_lea.hbm %s4214_s3, %s2711_s5  ;;  %s2917_s29 = scalar_lea.vmem %s2363_s18, 32 }
 0x368   : > { %v2246_v50 = vadd.f32 %v2245_v41, %v2244_v51  ;;  %v2317_v32 = vrot.slane %v2316_v33, 4  ;;  %p2918_p0 = scmp.ne.s32.totalorder %s2363_s18, %s2917_s29  ;;  %s3010_s4 = smov [#allocation5]  }
 0x369   : > { %s2921_s10 = sshll.u32 %s3010_s4, 4  ;;  %s2922_s10 = int_to_ptr.vmem [resolvable:$false] %s2921_s10 }
 0x36a   : > { %v2247_v4 = vrot.slane %v2246_v50, 2  ;;  %v2318_v18 = vadd.f32 %v2317_v32, %v2316_v33  ;;  %p2919_p1 = pnand %p2918_p0, %p3071_p4  ;;  %s2923_s15 = scalar_lea.vmem %s2922_s10, 64 }
 0x36b   : > { %p2924_p3 = scmp.lt.s32.totalorder %s2363_s18, %s2922_s10  ;;  %p2925_p5 = scmp.lt.s32.totalorder %s2923_s15, %s2917_s29 }
 0x36c   : > { %v2248_v40 = vadd.f32 %v2247_v4, %v2246_v50  ;;  %v2319_v21 = vrot.slane %v2318_v18, 2  ;;  %p2920_p2 = pneg %p2919_p1 }
 0x36d   : > { %p2926_p6 = por %p2925_p5, %p2924_p3 }
 0x36e   : > { %v2249_v16 = vrot.slane %v2248_v40, 1  ;;  %v2320_v62 = vadd.f32 %v2319_v21, %v2318_v18 }
 0x36f   : > { %p2927_p7 = pnand %p2926_p6, %p2920_p2 }
 0x370   : > { %v2250_v53 = vadd.f32 %v2249_v16, %v2248_v40  ;;  %v2321_v63 = vrot.slane %v2320_v62, 1 }
 0x372   : > { %v2322_v35 = vadd.f32 %v2321_v63, %v2320_v62  ;;  %v2251_v52 = vadd.f32 %v2250_v53, %v2213_v30 }
 0x374   : > { %2252 = vst [vmem:[%s4119_s9] sm:$0x1] %v2251_v52  ;;  %v2323_v34 = vadd.f32 %v2322_v35, %v2253_v23 }
 0x376   : > { %2324 = vst [vmem:[%s4119_s9 + $0x1] sm:$0x1] %v2323_v34 }
 0x377   : > { %2930 = shalt.err (!%p2927_p7)
}
 0x378   : > { %s2931_s7 = scalar_lea.hbm %s2360_s27, 32  ;;  %s2935_s8 = scalar_lea.hbm %s4214_s3, 64 }
 0x379   : > { %p2932_p9 = scmp.ne.s32.totalorder %s2360_s27, %s2931_s7  ;;  %p2936_p12 = scmp.lt.s32.totalorder %s2360_s27, %s4214_s3 }
 0x37a   : > { %p2937_p13 = scmp.lt.s32.totalorder %s2935_s8, %s2931_s7 }
 0x37b   : > { %p2933_p10 = pnand %p2932_p9, %p3071_p4 }
 0x37c   : > { %p2938_p0 = por %p2937_p13, %p2936_p12 }
 0x37d   : > { %p2934_p11 = pneg %p2933_p10 }
 0x37f   : > { %p2939_p1 = pnand %p2938_p0, %p2934_p11 }
 0x381   : > { %2942 = shalt.err (!%p2939_p1)
}
 0x382   : > { %2822 = dma.vmem_to_hbm [thread:$0]  (%p3071_p4), %s2363_s18, 32, %s2360_s27, %s2331_s28  }
 0x383 PF: > { %p2832_p2 = scmp.ge.s32.totalorder %s2997_s17, 2  ;;  %s2374_s19 = sand.u32 1, %s2977_s12  }
 0x384   : > { %s2375_s21 = scalar_lea.sflag [#allocation4], %s2374_s19 }
 0x385   : > { %p2826_p3 = pnand %p2832_p2, %p3078_p8 }
 0x387   : > { %p2827_p5 = pneg %p2826_p3 }
 0x389   : > { %2968 = dma.done.wait (%p2827_p5), %s2375_s21, 4096  }
 0x38a   : > { %2970 = vsyncadd (%p2827_p5), %s2375_s21, 4294963200  ;;  %s2384_s5 = scalar_lea.sflag [#allocation6], %s2374_s19 }
 0x38b   : > { %2972 = dma.done.wait (%p2827_p5), %s2384_s5, 32  }
 0x38c   : > { %2974 = vsyncadd (%p2827_p5), %s2384_s5, 4294967264  ;;  %s20_s17 = sadd.s32 1, %s2997_s17   ;;  %s4217_s12 = smov %s2981_s13 }
 0x38d   : > { %p17_p6 = scmp.ge.s32.totalorder %s20_s17, 4   ;;  %s4218_s13 = smov %s2985_s14 }
 0x38e   : > { %s4219_s14 = smov %s3084_s25  ;;  %s4220_s15 = smov %s2993_s16 }
 0x38f   : > { %s4221_s16 = smov %s4223_s20  ;;  %19 = sbr.rel (!%p17_p6) target bundleno = 6 (0x6), region = 87 }
 0x394   :  { %2389 = vsyncpa [#allocation4], 1 }
 0x395   :  { %2391 = vsyncpa [#allocation4 + $0x1], 1 }
 0x396   :  { %2392 = vsyncpa [#allocation6], 1 }
 0x397   :  { %2394 = vsyncpa [#allocation6 + $0x1], 1 }

</bundles_post_ra>
